<compile_context>
chip_gen: v7x
topology: tpu7x:2x2x1
jax: 0.10.0
libtpu: 0.0.40
codegen_flags: <defaults>
</compile_context>

<pallas_src>
import jax
import jax.numpy as jnp
from jax import lax
from jax.experimental import pallas as pl
from jax.experimental.pallas import tpu as pltpu
import numpy as np


def _make_kernel(num_layers, C0, S0):
    """Kernel over one batch tile; lane axis = fused (length l, batch b)."""

    def kernel(s_ref, x2_ref, p1_ref, p2_ref, *rest):
        out_ref = rest[-1]                              # [c_last, CB] f32
        w0p_ref, w0i_ref, b0_ref = rest[0], rest[1], rest[2]
        wb = rest[3:-1]                                 # (w1, b1, w2, b2, ...)
        f32 = jnp.float32

        # ---- squared distances in the flat (l, b)-on-lanes layout ----------
        # s_ref : [3, CB]       s_ref[k, l*Bt+b] = xyz1[b, l, k]   (k < 3)
        # x2_ref: [3, S0, Bt]   x2_ref[k, s, b]  = xyz2[b, k, s]   (k < 3)
        s = s_ref[...]
        src = [s[k:k + 1, :] for k in range(3)]                    # [1, CB]
        src_sq = src[0] * src[0] + src[1] * src[1] + src[2] * src[2]

        x2 = x2_ref[...]
        dst = [x2[k] for k in range(3)]                            # [S0, Bt]
        dst_sq = dst[0] * dst[0] + dst[1] * dst[1] + dst[2] * dst[2]
        # lane-tile the S-side tensors over the C0 length positions
        dst_w = [jnp.concatenate([d] * C0, axis=-1) for d in dst]  # [S0, CB]
        dst_sq_w = jnp.concatenate([dst_sq] * C0, axis=-1)         # [S0, CB]

        cross = dst_w[0] * src[0] + dst_w[1] * src[1] + dst_w[2] * src[2]
        dist = dst_sq_w + src_sq - 2.0 * cross                     # [S0, CB]

        # ---- 3 smallest distances + indices (stable, matches argsort) ------
        iota = lax.broadcasted_iota(jnp.int32, dist.shape, 0)      # S index
        work = dist
        vals, idxs = [], []
        for _ in range(3):
            mv = jnp.min(work, axis=0, keepdims=True)              # [1, CB]
            mi = jnp.min(jnp.where(work <= mv, iota, S0),
                         axis=0, keepdims=True)                    # [1, CB]
            vals.append(mv)
            idxs.append(mi)
            work = jnp.where(iota == mi, jnp.inf, work)

        # inverse-distance weights; reciprocals on the (otherwise idle) EUP.
        # Padded batch lanes see dist == 0 -> reciprocal(1e-8) ~ 1e8 (finite).
        r = [pl.reciprocal(v + 1e-8, approx=True) for v in vals]
        inv_norm = pl.reciprocal(r[0] + r[1] + r[2], approx=True)
        w_flat = ((iota == idxs[0]).astype(f32) * (r[0] * inv_norm)
                  + (iota == idxs[1]).astype(f32) * (r[1] * inv_norm)
                  + (iota == idxs[2]).astype(f32) * (r[2] * inv_norm))  # [S0, CB]

        # ---- interpolated features, one pass for all (l, b) columns --------
        # p2_ref: [D, S0, Bt]   p2_ref[j, s, b] = points2[b, j, s]
        p2w = jnp.concatenate([p2_ref[...]] * C0, axis=-1)         # [D, S0, CB]
        interp = jnp.sum(w_flat[None, :, :] * p2w, axis=1)         # [D, CB] f32

        # ---- MLP: one lane-dense [Cout, Cin] @ [Cin, CB] dot per layer ------
        # layer 0: concat(points1, interp) expressed as a split -> two dots.
        y = jnp.dot(w0p_ref[...], p1_ref[...],
                    preferred_element_type=f32)                    # [C1, CB]
        y = y + jnp.dot(w0i_ref[...], interp.astype(jnp.bfloat16),
                        preferred_element_type=f32)
        x = jnp.maximum(y + b0_ref[...], 0.0)

        for i in range(1, num_layers):
            w_ref, b_ref = wb[2 * (i - 1)], wb[2 * (i - 1) + 1]
            y = jnp.dot(w_ref[...], x.astype(jnp.bfloat16),
                        preferred_element_type=f32)
            x = jnp.maximum(y + b_ref[...], 0.0)

        out_ref[...] = x                                           # [c_last, CB]

    return kernel


def pointnet_fp_forward(xyz1, xyz2, points1, points2, fold_ws, fold_bs,
                        batch_tile=None):
    B, C0, N0 = xyz1.shape
    _, C2, S0 = xyz2.shape
    _, D, _ = points1.shape
    assert points2.shape == (B, D, S0)
    assert D == C0, "torch concat in forward() requires D == C0"
    assert C0 >= 3 and C2 >= 3 and N0 >= 3
    # TODO(synk): S == 1 broadcast path of the torch forward not implemented.
    assert S0 >= 3, "need at least 3 sampled points for 3-NN interpolation"
    num_layers = len(fold_ws)
    c_last = int(fold_ws[-1].shape[0])
    assert fold_ws[0].shape[1] == N0 + D

    # ---- batch tile: >= 2 grid steps once B >= 256 (v7x has 2 TensorCores) --
    if batch_tile is None:
        batch_tile = min(512, 128 * max(1, B // 256))
    Bt = int(batch_tile)
    assert Bt % 128 == 0, "batch_tile must be a multiple of 128"
    G = (B + Bt - 1) // Bt
    B_pad = G * Bt
    CB = C0 * Bt                      # fused (length, batch) lane width

    if B_pad != B:
        pad = ((0, B_pad - B), (0, 0), (0, 0))
        xyz1 = jnp.pad(xyz1, pad)
        xyz2 = jnp.pad(xyz2, pad)
        points1 = jnp.pad(points1, pad)
        points2 = jnp.pad(points2, pad)

    # ---- wrapper-side layout plumbing: (length, batch) onto the lane axis ---
    # (single-pass XLA transposes of tiny tensors, outside the kernel)
    f32, bf16 = jnp.float32, jnp.bfloat16
    s_flat = (xyz1[:, :, :3].astype(f32)
              .reshape(G, Bt, C0, 3).transpose(3, 0, 2, 1)
              .reshape(3, G * CB))                                  # [3, G*CB]
    x2_t = jnp.transpose(xyz2[:, :3, :], (1, 2, 0)).astype(f32)     # [3, S0, Bp]
    p1_flat = (points1.astype(bf16)
               .reshape(G, Bt, D, N0).transpose(3, 0, 2, 1)
               .reshape(N0, G * CB))                                # [N0, G*CB]
    p2_t = jnp.transpose(points2, (1, 2, 0)).astype(f32)            # [D, S0, Bp]

    # pre-split layer-0 weight (no in-kernel slicing of the weight tile)
    w0_p1 = fold_ws[0][:, :N0].astype(bf16)                         # [C1, N0]
    w0_int = fold_ws[0][:, N0:].astype(bf16)                        # [C1, D]

    in_specs = [
        pl.BlockSpec((3, CB), lambda g: (0, g)),
        pl.BlockSpec((3, S0, Bt), lambda g: (0, 0, g)),
        pl.BlockSpec((N0, CB), lambda g: (0, g)),
        pl.BlockSpec((D, S0, Bt), lambda g: (0, 0, g)),
    ]
    args = [s_flat, x2_t, p1_flat, p2_t]

    # Constant-index weight/bias blocks: fetched once, reused every step.
    # (pl.Buffered(1) single-buffering skipped on purpose — a few KiB only.)
    def const_spec(a):
        return pl.BlockSpec(tuple(a.shape), lambda g: (0,) * a.ndim)

    args += [w0_p1, w0_int, fold_bs[0].astype(f32)]
    in_specs += [const_spec(a) for a in args[-3:]]
    for w, bvec in zip(fold_ws[1:], fold_bs[1:]):
        wa = w.astype(bf16)
        ba = bvec.astype(f32)
        args += [wa, ba]
        in_specs += [const_spec(wa), const_spec(ba)]

    # ---- VMEM budget: measured block sizes + TPU-generation capacity --------
    io_bytes = 2 * (3 * CB * 4 + 3 * S0 * Bt * 4 + N0 * CB * 2
                    + D * S0 * Bt * 4 + c_last * CB * 4)            # dbl-buffered
    wt_bytes = 2 * sum(int(a.size) * int(a.dtype.itemsize) for a in args[4:])
    max_c = max(int(w.shape[0]) for w in fold_ws)
    scratch_bytes = (8 * S0 * CB + D * S0 * CB + (D + 2 * max_c) * CB) * 4
    try:
        cap = int(getattr(pltpu.get_tpu_info(), "vmem_capacity_bytes",
                          64 * 1024 * 1024))
    except Exception:
        cap = 64 * 1024 * 1024                                       # v7x-safe
    vmem_limit = int(min(max(io_bytes + wt_bytes + scratch_bytes + (8 << 20),
                             16 << 20),
                         int(0.75 * cap)))

    kernel = _make_kernel(num_layers, C0, S0)
    out_flat = pl.pallas_call(
        kernel,
        grid=(G,),
        in_specs=in_specs,
        out_specs=pl.BlockSpec((c_last, CB), lambda g: (0, g)),
        out_shape=jax.ShapeDtypeStruct((c_last, G * CB), jnp.float32),
        compiler_params=pltpu.CompilerParams(
            dimension_semantics=("parallel",),      # batch tiles independent
            vmem_limit_bytes=vmem_limit),
    )(*args)

    # [c_last, G*C0*Bt] -> [B, c_last, L]   (L = D = C0; free layout plumbing)
    out = (out_flat.reshape(c_last, G, C0, Bt)
           .transpose(1, 3, 0, 2).reshape(B_pad, c_last, C0))
    return out[:B]


# ------------------------- parameter setup (glue) ---------------------------
def init_params(key, in_channel, mlp):
    conv_ws, conv_bs, gammas, betas, means, variances = [], [], [], [], [], []
    last = in_channel
    for out_ch in mlp:
        key, k1, k2, k3, k4, k5, k6 = jax.random.split(key, 7)
        conv_ws.append(0.2 * jax.random.normal(k1, (out_ch, last), jnp.float32))
        conv_bs.append(0.1 * jax.random.normal(k2, (out_ch,), jnp.float32))
        gammas.append(jax.random.uniform(k3, (out_ch,), jnp.float32, 0.5, 1.5))
        betas.append(0.1 * jax.random.normal(k4, (out_ch,), jnp.float32))
        means.append(0.1 * jax.random.normal(k5, (out_ch,), jnp.float32))
        variances.append(jax.random.uniform(k6, (out_ch,), jnp.float32, 0.5, 1.5))
        last = out_ch
    return conv_ws, conv_bs, gammas, betas, means, variances


def fold_conv_bn(conv_ws, conv_bs, gammas, betas, means, variances, eps=1e-5):
    fold_ws, fold_bs = [], []
    for w, b, g, bt, m, v in zip(conv_ws, conv_bs, gammas, betas, means, variances):
        scale = g / jnp.sqrt(v + eps)                  # eval-mode BN folded
        fold_ws.append(w * scale[:, None])
        fold_bs.append(((b - m) * scale + bt)[:, None])
    return fold_ws, fold_bs


# --------------------- pure-JAX reference (literal torch port) --------------
def reference_forward(xyz1, xyz2, points1, points2, params, eps=1e-5):
    conv_ws, conv_bs, gammas, betas, means, variances = params
    x1 = jnp.swapaxes(xyz1, 2, 1)
    p1 = jnp.swapaxes(points1, 2, 1)
    x1 = jnp.transpose(x1, (0, 2, 1))          # back to [B, C0, N]
    x2 = jnp.transpose(xyz2, (0, 2, 1))        # [B, S, C0]
    p2 = jnp.transpose(points2, (0, 2, 1))     # [B, S, D]
    B = x1.shape[0]
    src3 = x1[:, :, :3]
    dst3 = x2[:, :, :3]
    dist = (-2.0 * jnp.einsum('bnc,bmc->bnm', src3, dst3)
            + jnp.sum(src3 ** 2, -1)[:, :, None]
            + jnp.sum(dst3 ** 2, -1)[:, None, :])
    idx = jnp.argsort(dist, axis=-1)[:, :, :3]
    d3 = jnp.take_along_axis(dist, idx, axis=-1)
    recip = 1.0 / (d3 + 1e-8)
    weight = recip / jnp.sum(recip, axis=2, keepdims=True)
    bidx = jnp.arange(B)[:, None, None]
    gathered = p2[bidx, idx, :]                              # [B, C0, 3, D]
    interp = jnp.sum(gathered * weight[..., None], axis=2)   # [B, C0, D]
    p1p = jnp.transpose(p1, (0, 2, 1))                       # [B, D, N]
    new_points = jnp.concatenate([p1p, interp], axis=-1)
    new_points = jnp.transpose(new_points, (0, 2, 1))        # [B, Cin, L]
    x = new_points
    for w, b, g, bt, m, v in zip(conv_ws, conv_bs, gammas, betas, means, variances):
        y = jnp.einsum('oc,bcl->bol', w, x) + b[None, :, None]
        y = ((y - m[None, :, None]) / jnp.sqrt(v + eps)[None, :, None]
             * g[None, :, None] + bt[None, :, None])
        x = jnp.maximum(y, 0.0)
    return x


if __name__ == "__main__":
    # small per-batch shapes; B = 256 -> default Bt = 128, G = 2 grid steps
    # (exercises the multi-block "parallel" path; fused lane width = 384).
    B, C0, N0, S0 = 256, 3, 16, 8
    D = 3                        # must equal C0 (torch concat requirement)
    in_channel = N0 + D          # channel dim seen by the first 1x1 conv
    mlp = (32, 16)

    key = jax.random.PRNGKey(0)
    key, kx1, kx2, kp1, kp2, kparam = jax.random.split(key, 6)
    xyz1 = jax.random.normal(kx1, (B, C0, N0), jnp.float32)
    xyz2 = jax.random.normal(kx2, (B, C0, S0), jnp.float32)
    points1 = jax.random.normal(kp1, (B, D, N0), jnp.float32)
    points2 = jax.random.normal(kp2, (B, D, S0), jnp.float32)

    params = init_params(kparam, in_channel, mlp)
    fold_ws, fold_bs = fold_conv_bn(*params)

    out = pointnet_fp_forward(xyz1, xyz2, points1, points2, fold_ws, fold_bs)
    out = jax.block_until_ready(out)

    ref = jax.block_until_ready(
        reference_forward(xyz1, xyz2, points1, points2, params))
    assert out.shape == (B, mlp[-1], D)
    # bf16 MXU operands + approx reciprocals shift numerics by ~1e-2 rel,
    # comfortably inside the 5e-2 tolerance.
    np.testing.assert_allclose(np.asarray(out), np.asarray(ref),
                               rtol=5e-2, atol=5e-2)
    print("KERNEL_OK")
</pallas_src>

<mosaic_0001>
module attributes {stable_mosaic.version = 11 : i64} {
  func.func @kernel(%arg0: i32, %arg1: memref<3x384xf32, #tpu.memory_space<vmem>>, %arg2: memref<3x8x128xf32, #tpu.memory_space<vmem>>, %arg3: memref<16x384xbf16, #tpu.memory_space<vmem>>, %arg4: memref<3x8x128xf32, #tpu.memory_space<vmem>>, %arg5: memref<32x16xbf16, #tpu.memory_space<vmem>>, %arg6: memref<32x3xbf16, #tpu.memory_space<vmem>>, %arg7: memref<32x1xf32, #tpu.memory_space<vmem>>, %arg8: memref<16x32xbf16, #tpu.memory_space<vmem>>, %arg9: memref<16x1xf32, #tpu.memory_space<vmem>>, %arg10: memref<16x384xf32, #tpu.memory_space<vmem>>) attributes {dimension_semantics = [#tpu.dimension_semantics<parallel>], iteration_bounds = array<i64: 2>, scalar_prefetch = 0 : i64, scratch_operands = 0 : i64, tpu.core_type = #tpu.core_type<tc>, window_params = [{transform_indices = @transform_0, window_bounds = array<i64: 3, 384>}, {transform_indices = @transform_1, window_bounds = array<i64: 3, 8, 128>}, {transform_indices = @transform_2, window_bounds = array<i64: 16, 384>}, {transform_indices = @transform_3, window_bounds = array<i64: 3, 8, 128>}, {pipeline_mode = #tpu.pipeline_mode<synchronous>, transform_indices = @transform_4, window_bounds = array<i64: 32, 16>}, {pipeline_mode = #tpu.pipeline_mode<synchronous>, transform_indices = @transform_5, window_bounds = array<i64: 32, 3>}, {pipeline_mode = #tpu.pipeline_mode<synchronous>, transform_indices = @transform_6, window_bounds = array<i64: 32, 1>}, {pipeline_mode = #tpu.pipeline_mode<synchronous>, transform_indices = @transform_7, window_bounds = array<i64: 16, 32>}, {pipeline_mode = #tpu.pipeline_mode<synchronous>, transform_indices = @transform_8, window_bounds = array<i64: 16, 1>}, {transform_indices = @transform_9, window_bounds = array<i64: 16, 384>}]} {
    %c0 = arith.constant 0 : index
    %c0_0 = arith.constant 0 : index
    %0 = vector.load %arg1[%c0, %c0_0] : memref<3x384xf32, #tpu.memory_space<vmem>>, vector<3x384xf32>
    %1 = vector.extract_strided_slice %0 {offsets = [0, 0], sizes = [1, 384], strides = [1, 1]} : vector<3x384xf32> to vector<1x384xf32>
    %2 = vector.extract_strided_slice %0 {offsets = [1, 0], sizes = [1, 384], strides = [1, 1]} : vector<3x384xf32> to vector<1x384xf32>
    %3 = vector.extract_strided_slice %0 {offsets = [2, 0], sizes = [1, 384], strides = [1, 1]} : vector<3x384xf32> to vector<1x384xf32>
    %4 = arith.mulf %1, %1 : vector<1x384xf32>
    %5 = arith.mulf %2, %2 : vector<1x384xf32>
    %6 = arith.addf %4, %5 : vector<1x384xf32>
    %7 = arith.mulf %3, %3 : vector<1x384xf32>
    %8 = arith.addf %6, %7 : vector<1x384xf32>
    %c0_1 = arith.constant 0 : index
    %c0_2 = arith.constant 0 : index
    %c0_3 = arith.constant 0 : index
    %9 = vector.load %arg2[%c0_1, %c0_2, %c0_3] : memref<3x8x128xf32, #tpu.memory_space<vmem>>, vector<3x8x128xf32>
    %10 = vector.extract_strided_slice %9 {offsets = [0, 0, 0], sizes = [1, 8, 128], strides = [1, 1, 1]} : vector<3x8x128xf32> to vector<1x8x128xf32>
    %11 = vector.shape_cast %10 : vector<1x8x128xf32> to vector<8x128xf32>
    %12 = vector.extract_strided_slice %9 {offsets = [1, 0, 0], sizes = [1, 8, 128], strides = [1, 1, 1]} : vector<3x8x128xf32> to vector<1x8x128xf32>
    %13 = vector.shape_cast %12 : vector<1x8x128xf32> to vector<8x128xf32>
    %14 = vector.extract_strided_slice %9 {offsets = [2, 0, 0], sizes = [1, 8, 128], strides = [1, 1, 1]} : vector<3x8x128xf32> to vector<1x8x128xf32>
    %15 = vector.shape_cast %14 : vector<1x8x128xf32> to vector<8x128xf32>
    %16 = arith.mulf %11, %11 : vector<8x128xf32>
    %17 = arith.mulf %13, %13 : vector<8x128xf32>
    %18 = arith.addf %16, %17 : vector<8x128xf32>
    %19 = arith.mulf %15, %15 : vector<8x128xf32>
    %20 = arith.addf %18, %19 : vector<8x128xf32>
    %21 = tpu.concatenate %11, %11, %11 in 1 : vector<8x128xf32>, vector<8x128xf32>, vector<8x128xf32> -> vector<8x384xf32>
    %22 = tpu.concatenate %13, %13, %13 in 1 : vector<8x128xf32>, vector<8x128xf32>, vector<8x128xf32> -> vector<8x384xf32>
    %23 = tpu.concatenate %15, %15, %15 in 1 : vector<8x128xf32>, vector<8x128xf32>, vector<8x128xf32> -> vector<8x384xf32>
    %24 = tpu.concatenate %20, %20, %20 in 1 : vector<8x128xf32>, vector<8x128xf32>, vector<8x128xf32> -> vector<8x384xf32>
    %25 = vector.broadcast %1 : vector<1x384xf32> to vector<8x384xf32>
    %26 = arith.mulf %21, %25 : vector<8x384xf32>
    %27 = vector.broadcast %2 : vector<1x384xf32> to vector<8x384xf32>
    %28 = arith.mulf %22, %27 : vector<8x384xf32>
    %29 = arith.addf %26, %28 : vector<8x384xf32>
    %30 = vector.broadcast %3 : vector<1x384xf32> to vector<8x384xf32>
    %31 = arith.mulf %23, %30 : vector<8x384xf32>
    %32 = arith.addf %29, %31 : vector<8x384xf32>
    %33 = vector.broadcast %8 : vector<1x384xf32> to vector<8x384xf32>
    %34 = arith.addf %24, %33 : vector<8x384xf32>
    %cst = arith.constant 2.000000e+00 : f32
    %35 = vector.broadcast %cst : f32 to vector<8x384xf32>
    %36 = arith.mulf %35, %32 : vector<8x384xf32>
    %37 = arith.subf %34, %36 : vector<8x384xf32>
    %38 = tpu.iota {dimensions = array<i32: 0>} : vector<8x384xi32>
    %cst_4 = arith.constant dense<0x7F800000> : vector<384xf32>
    %39 = vector.multi_reduction <minimumf>, %37, %cst_4 [0] : vector<8x384xf32> to vector<384xf32>
    %40 = vector.shape_cast %39 : vector<384xf32> to vector<1x384xf32>
    %41 = vector.broadcast %40 : vector<1x384xf32> to vector<8x384xf32>
    %42 = arith.cmpf ole, %37, %41 : vector<8x384xf32>
    %c8_i32 = arith.constant 8 : i32
    %43 = vector.broadcast %c8_i32 : i32 to vector<8x384xi32>
    %44 = arith.select %42, %38, %43 : vector<8x384xi1>, vector<8x384xi32>
    %cst_5 = arith.constant dense<2147483647> : vector<384xi32>
    %45 = vector.multi_reduction <minsi>, %44, %cst_5 [0] : vector<8x384xi32> to vector<384xi32>
    %46 = vector.shape_cast %45 : vector<384xi32> to vector<1x384xi32>
    %47 = vector.broadcast %46 : vector<1x384xi32> to vector<8x384xi32>
    %48 = arith.cmpi eq, %38, %47 : vector<8x384xi32>
    %cst_6 = arith.constant 0x7F800000 : f32
    %49 = vector.broadcast %cst_6 : f32 to vector<8x384xf32>
    %50 = arith.select %48, %49, %37 : vector<8x384xi1>, vector<8x384xf32>
    %cst_7 = arith.constant dense<0x7F800000> : vector<384xf32>
    %51 = vector.multi_reduction <minimumf>, %50, %cst_7 [0] : vector<8x384xf32> to vector<384xf32>
    %52 = vector.shape_cast %51 : vector<384xf32> to vector<1x384xf32>
    %53 = vector.broadcast %52 : vector<1x384xf32> to vector<8x384xf32>
    %54 = arith.cmpf ole, %50, %53 : vector<8x384xf32>
    %c8_i32_8 = arith.constant 8 : i32
    %55 = vector.broadcast %c8_i32_8 : i32 to vector<8x384xi32>
    %56 = arith.select %54, %38, %55 : vector<8x384xi1>, vector<8x384xi32>
    %cst_9 = arith.constant dense<2147483647> : vector<384xi32>
    %57 = vector.multi_reduction <minsi>, %56, %cst_9 [0] : vector<8x384xi32> to vector<384xi32>
    %58 = vector.shape_cast %57 : vector<384xi32> to vector<1x384xi32>
    %59 = vector.broadcast %58 : vector<1x384xi32> to vector<8x384xi32>
    %60 = arith.cmpi eq, %38, %59 : vector<8x384xi32>
    %cst_10 = arith.constant 0x7F800000 : f32
    %61 = vector.broadcast %cst_10 : f32 to vector<8x384xf32>
    %62 = arith.select %60, %61, %50 : vector<8x384xi1>, vector<8x384xf32>
    %cst_11 = arith.constant dense<0x7F800000> : vector<384xf32>
    %63 = vector.multi_reduction <minimumf>, %62, %cst_11 [0] : vector<8x384xf32> to vector<384xf32>
    %64 = vector.shape_cast %63 : vector<384xf32> to vector<1x384xf32>
    %65 = vector.broadcast %64 : vector<1x384xf32> to vector<8x384xf32>
    %66 = arith.cmpf ole, %62, %65 : vector<8x384xf32>
    %c8_i32_12 = arith.constant 8 : i32
    %67 = vector.broadcast %c8_i32_12 : i32 to vector<8x384xi32>
    %68 = arith.select %66, %38, %67 : vector<8x384xi1>, vector<8x384xi32>
    %cst_13 = arith.constant dense<2147483647> : vector<384xi32>
    %69 = vector.multi_reduction <minsi>, %68, %cst_13 [0] : vector<8x384xi32> to vector<384xi32>
    %70 = vector.shape_cast %69 : vector<384xi32> to vector<1x384xi32>
    %cst_14 = arith.constant 9.99999993E-9 : f32
    %71 = vector.broadcast %cst_14 : f32 to vector<1x384xf32>
    %72 = arith.addf %40, %71 : vector<1x384xf32>
    %73 = tpu.reciprocal %72 {approx = true} : vector<1x384xf32> -> vector<1x384xf32>
    %cst_15 = arith.constant 9.99999993E-9 : f32
    %74 = vector.broadcast %cst_15 : f32 to vector<1x384xf32>
    %75 = arith.addf %52, %74 : vector<1x384xf32>
    %76 = tpu.reciprocal %75 {approx = true} : vector<1x384xf32> -> vector<1x384xf32>
    %cst_16 = arith.constant 9.99999993E-9 : f32
    %77 = vector.broadcast %cst_16 : f32 to vector<1x384xf32>
    %78 = arith.addf %64, %77 : vector<1x384xf32>
    %79 = tpu.reciprocal %78 {approx = true} : vector<1x384xf32> -> vector<1x384xf32>
    %80 = arith.addf %73, %76 : vector<1x384xf32>
    %81 = arith.addf %80, %79 : vector<1x384xf32>
    %82 = tpu.reciprocal %81 {approx = true} : vector<1x384xf32> -> vector<1x384xf32>
    %83 = vector.broadcast %46 : vector<1x384xi32> to vector<8x384xi32>
    %84 = arith.cmpi eq, %38, %83 : vector<8x384xi32>
    %85 = arith.extui %84 : vector<8x384xi1> to vector<8x384xi32>
    %86 = arith.sitofp %85 : vector<8x384xi32> to vector<8x384xf32>
    %87 = arith.mulf %73, %82 : vector<1x384xf32>
    %88 = vector.broadcast %87 : vector<1x384xf32> to vector<8x384xf32>
    %89 = arith.mulf %86, %88 : vector<8x384xf32>
    %90 = vector.broadcast %58 : vector<1x384xi32> to vector<8x384xi32>
    %91 = arith.cmpi eq, %38, %90 : vector<8x384xi32>
    %92 = arith.extui %91 : vector<8x384xi1> to vector<8x384xi32>
    %93 = arith.sitofp %92 : vector<8x384xi32> to vector<8x384xf32>
    %94 = arith.mulf %76, %82 : vector<1x384xf32>
    %95 = vector.broadcast %94 : vector<1x384xf32> to vector<8x384xf32>
    %96 = arith.mulf %93, %95 : vector<8x384xf32>
    %97 = arith.addf %89, %96 : vector<8x384xf32>
    %98 = vector.broadcast %70 : vector<1x384xi32> to vector<8x384xi32>
    %99 = arith.cmpi eq, %38, %98 : vector<8x384xi32>
    %100 = arith.extui %99 : vector<8x384xi1> to vector<8x384xi32>
    %101 = arith.sitofp %100 : vector<8x384xi32> to vector<8x384xf32>
    %102 = arith.mulf %79, %82 : vector<1x384xf32>
    %103 = vector.broadcast %102 : vector<1x384xf32> to vector<8x384xf32>
    %104 = arith.mulf %101, %103 : vector<8x384xf32>
    %105 = arith.addf %97, %104 : vector<8x384xf32>
    %c0_17 = arith.constant 0 : index
    %c0_18 = arith.constant 0 : index
    %c0_19 = arith.constant 0 : index
    %106 = vector.load %arg4[%c0_17, %c0_18, %c0_19] : memref<3x8x128xf32, #tpu.memory_space<vmem>>, vector<3x8x128xf32>
    %107 = tpu.concatenate %106, %106, %106 in 2 : vector<3x8x128xf32>, vector<3x8x128xf32>, vector<3x8x128xf32> -> vector<3x8x384xf32>
    %108 = vector.shape_cast %105 : vector<8x384xf32> to vector<1x8x384xf32>
    %109 = vector.broadcast %108 : vector<1x8x384xf32> to vector<3x8x384xf32>
    %110 = arith.mulf %109, %107 : vector<3x8x384xf32>
    %cst_20 = arith.constant dense<0.000000e+00> : vector<3x384xf32>
    %111 = vector.multi_reduction <add>, %110, %cst_20 [1] : vector<3x8x384xf32> to vector<3x384xf32>
    %c0_21 = arith.constant 0 : index
    %c0_22 = arith.constant 0 : index
    %112 = vector.load %arg5[%c0_21, %c0_22] : memref<32x16xbf16, #tpu.memory_space<vmem>>, vector<32x16xbf16>
    %c0_23 = arith.constant 0 : index
    %c0_24 = arith.constant 0 : index
    %113 = vector.load %arg3[%c0_23, %c0_24] : memref<16x384xbf16, #tpu.memory_space<vmem>>, vector<16x384xbf16>
    %cst_25 = arith.constant dense<0.000000e+00> : vector<32x384xf32>
    %114 = tpu.matmul %112, %113, %cst_25 {dimension_numbers = #tpu.dot_dimension_numbers<[1], [0], [0], [1], [0, 0, 1, 1], [], []>} : vector<32x16xbf16>, vector<16x384xbf16>, vector<32x384xf32> -> vector<32x384xf32>
    %c0_26 = arith.constant 0 : index
    %c0_27 = arith.constant 0 : index
    %115 = vector.load %arg6[%c0_26, %c0_27] : memref<32x3xbf16, #tpu.memory_space<vmem>>, vector<32x3xbf16>
    %116 = arith.truncf %111 : vector<3x384xf32> to vector<3x384xbf16>
    %cst_28 = arith.constant dense<0.000000e+00> : vector<32x384xf32>
    %117 = tpu.matmul %115, %116, %cst_28 {dimension_numbers = #tpu.dot_dimension_numbers<[1], [0], [0], [1], [0, 0, 1, 1], [], []>} : vector<32x3xbf16>, vector<3x384xbf16>, vector<32x384xf32> -> vector<32x384xf32>
    %118 = arith.addf %114, %117 : vector<32x384xf32>
    %c0_29 = arith.constant 0 : index
    %c0_30 = arith.constant 0 : index
    %119 = vector.load %arg7[%c0_29, %c0_30] : memref<32x1xf32, #tpu.memory_space<vmem>>, vector<32x1xf32>
    %120 = vector.broadcast %119 : vector<32x1xf32> to vector<32x384xf32>
    %121 = arith.addf %118, %120 : vector<32x384xf32>
    %cst_31 = arith.constant 0.000000e+00 : f32
    %122 = vector.broadcast %cst_31 : f32 to vector<32x384xf32>
    %123 = arith.maximumf %121, %122 : vector<32x384xf32>
    %c0_32 = arith.constant 0 : index
    %c0_33 = arith.constant 0 : index
    %124 = vector.load %arg8[%c0_32, %c0_33] : memref<16x32xbf16, #tpu.memory_space<vmem>>, vector<16x32xbf16>
    %125 = arith.truncf %123 : vector<32x384xf32> to vector<32x384xbf16>
    %cst_34 = arith.constant dense<0.000000e+00> : vector<16x384xf32>
    %126 = tpu.matmul %124, %125, %cst_34 {dimension_numbers = #tpu.dot_dimension_numbers<[1], [0], [0], [1], [0, 0, 1, 1], [], []>} : vector<16x32xbf16>, vector<32x384xbf16>, vector<16x384xf32> -> vector<16x384xf32>
    %c0_35 = arith.constant 0 : index
    %c0_36 = arith.constant 0 : index
    %127 = vector.load %arg9[%c0_35, %c0_36] : memref<16x1xf32, #tpu.memory_space<vmem>>, vector<16x1xf32>
    %128 = vector.broadcast %127 : vector<16x1xf32> to vector<16x384xf32>
    %129 = arith.addf %126, %128 : vector<16x384xf32>
    %cst_37 = arith.constant 0.000000e+00 : f32
    %130 = vector.broadcast %cst_37 : f32 to vector<16x384xf32>
    %131 = arith.maximumf %129, %130 : vector<16x384xf32>
    %c0_38 = arith.constant 0 : index
    %c0_39 = arith.constant 0 : index
    %132 = vector.load %arg10[%c0_38, %c0_39] : memref<16x384xf32, #tpu.memory_space<vmem>>, vector<16x384xf32>
    tpu.vector_store %arg10[%c0_38, %c0_39], %131 {strides = array<i32>} : memref<16x384xf32, #tpu.memory_space<vmem>>, vector<16x384xf32>,
    return
  }
  func.func @transform_0(%arg0: i32) -> (i32, i32) {
    %c0_i32 = arith.constant 0 : i32
    %c0_i32_0 = arith.constant 0 : i32
    return %c0_i32, %arg0 : i32, i32
  }
  func.func @transform_1(%arg0: i32) -> (i32, i32, i32) {
    %c0_i32 = arith.constant 0 : i32
    %c0_i32_0 = arith.constant 0 : i32
    %c0_i32_1 = arith.constant 0 : i32
    return %c0_i32, %c0_i32_0, %arg0 : i32, i32, i32
  }
  func.func @transform_2(%arg0: i32) -> (i32, i32) {
    %c0_i32 = arith.constant 0 : i32
    %c0_i32_0 = arith.constant 0 : i32
    return %c0_i32, %arg0 : i32, i32
  }
  func.func @transform_3(%arg0: i32) -> (i32, i32, i32) {
    %c0_i32 = arith.constant 0 : i32
    %c0_i32_0 = arith.constant 0 : i32
    %c0_i32_1 = arith.constant 0 : i32
    return %c0_i32, %c0_i32_0, %arg0 : i32, i32, i32
  }
  func.func @transform_4(%arg0: i32) -> (i32, i32) {
    %c0_i32 = arith.constant 0 : i32
    %c0_i32_0 = arith.constant 0 : i32
    %c0_i32_1 = arith.constant 0 : i32
    return %c0_i32, %c0_i32_0 : i32, i32
  }
  func.func @transform_5(%arg0: i32) -> (i32, i32) {
    %c0_i32 = arith.constant 0 : i32
    %c0_i32_0 = arith.constant 0 : i32
    %c0_i32_1 = arith.constant 0 : i32
    return %c0_i32, %c0_i32_0 : i32, i32
  }
  func.func @transform_6(%arg0: i32) -> (i32, i32) {
    %c0_i32 = arith.constant 0 : i32
    %c0_i32_0 = arith.constant 0 : i32
    %c0_i32_1 = arith.constant 0 : i32
    return %c0_i32, %c0_i32_0 : i32, i32
  }
  func.func @transform_7(%arg0: i32) -> (i32, i32) {
    %c0_i32 = arith.constant 0 : i32
    %c0_i32_0 = arith.constant 0 : i32
    %c0_i32_1 = arith.constant 0 : i32
    return %c0_i32, %c0_i32_0 : i32, i32
  }
  func.func @transform_8(%arg0: i32) -> (i32, i32) {
    %c0_i32 = arith.constant 0 : i32
    %c0_i32_0 = arith.constant 0 : i32
    %c0_i32_1 = arith.constant 0 : i32
    return %c0_i32, %c0_i32_0 : i32, i32
  }
  func.func @transform_9(%arg0: i32) -> (i32, i32) {
    %c0_i32 = arith.constant 0 : i32
    %c0_i32_0 = arith.constant 0 : i32
    return %c0_i32, %arg0 : i32, i32
  }
}

</mosaic_0001>

<bundles_post_ra>
// kernel: tpu_custom_call.1
= control target key start
LH: loop header
LB: loop body
LE: loop exit
PB: predicated region body
PF: predicated region fallthrough
CT: control target
= control target key end

     0   :  { %14 = vsyncpa [#allocation3], 0  ;;  %s2438_s0 = inlined_call_operand.hbm [shape: f32[3,768], index: 0, kind: input, shape index: {}]   ;;  %s2439_s1 = inlined_call_operand.vmem [shape: f32[3,8,256], index: 1, kind: input, shape index: {}]   ;;  %s2440_s2 = inlined_call_operand.vmem [shape: bf16[16,768], index: 2, kind: input, shape index: {}]   ;;  %s2441_s3 = inlined_call_operand.hbm [shape: f32[3,8,256], index: 3, kind: input, shape index: {}]   ;;  %s2442_s4 = inlined_call_operand.vmem [shape: bf16[32,16], index: 4, kind: input, shape index: {}]   ;;  %s2443_s5 = inlined_call_operand.vmem [shape: bf16[32,3], index: 5, kind: input, shape index: {}]   ;;  %s2444_s6 = inlined_call_operand.vmem [shape: f32[32,1], index: 6, kind: input, shape index: {}]   ;;  %s2445_s7 = inlined_call_operand.vmem [shape: bf16[16,32], index: 7, kind: input, shape index: {}]   ;;  %s2446_s8 = inlined_call_operand.vmem [shape: f32[16,1], index: 8, kind: input, shape index: {}]   ;;  %s2447_s9 = inlined_call_operand.hbm [shape: f32[16,768], index: 9, kind: output, shape index: {}]  }
   0x1   :  { %16 = vsyncpa [#allocation3 + $0x1], 0 }
   0x2   :  { %17 = vsyncpa [#allocation8], 0 }
   0x3   :  { %19 = vsyncpa [#allocation8 + $0x1], 0 }
   0x4   :  { %20 = vsyncpa [#allocation4], 0 }
   0x5   :  { %22 = vsyncpa [#allocation4 + $0x1], 0  ;;  %s1996_s30 = smov 0   ;;  %s1998_s10 = smov 0  }
   0x6   :  { %s2000_s11 = smov 0   ;;  %s2002_s12 = smov 0  }
   0x7 LB: > { %2454 = sst [smem:[#allocation13_spill]] %s1927_s11  ;;  %s2017_s13 = sadd.s32 4294967295, %s1931_s12   ;;  %s1931_s12 = sphi %s2002_s12, %s2465_s12   ;;  %s1927_s11 = sphi %s2000_s11, %s2470_s11   ;;  %s1923_s10 = sphi %s1998_s10, %s2469_s10   ;;  %s1919_s30 = sphi %s1996_s30, %s2468_s30  }
   0x8   : > { %s1620_s14 = sadd.s32 4294967294, %s1931_s12   ;;  %s2021_s15 = sadd.s32 1, %s1931_s12  }
   0x9   : > { %2455 = sst [smem:[#allocation14_spill]] %s2021_s15  ;;  %s35_s16 = sadd.s32 1, %s1927_s11 }
   0xa   : > { %s32_s17 = ssub.s32 %s1931_s12, %s2021_s15  ;;  %p42_p0 = scmp.ne.s32.totalorder %s1927_s11, %s1923_s10 }
   0xb   : > { %p33_p1 = scmp.eq.s32.totalorder %s32_s17, 0  ;;  %p43_p2 = scmp.eq.s32.totalorder %s1931_s12, 0 }
   0xc   : > { %p48_p3 = scmp.ne.s32.totalorder %s1923_s10, %s1919_s30  ;;  %p49_p4 = scmp.eq.s32.totalorder %s2017_s13, 0 }
   0xd   : > { %s2033_s18 = scalar_select %p33_p1, %s1927_s11, %s35_s16  }
   0xe   : > { %p2035_p5 = por %p43_p2, %p42_p0  ;;  %p2039_p6 = por %p49_p4, %p48_p3 }
   0xf   : > { %2456 = sst [smem:[#allocation15_spill]] %s2033_s18  ;;  %p255_p7 = scmp.eq.s32.totalorder %s2017_s13, 1 }
  0x10   : > { %s2458_s20 = scalar_select %p2039_p6, 1, 0 }
  0x11   : > { %p261_p8 = scmp.eq.s32.totalorder %s1620_s14, 1  ;;  %p2044_p9 = por %p255_p7, %p42_p0 }
  0x12   : > { %p2451_p11 = scmp.ge.s32.totalorder %s1931_s12, 2 }
  0x13   : > { %s2459_s21 = scalar_select %p2044_p9, 1, 0 }
  0x14   : > { %p2048_p10 = por %p261_p8, %p48_p3  ;;  %292 = sbr.rel (%p2451_p11) target bundleno = 90 (0x5a), region = 36 }
  0x15   : > { %s2056_s23 = sand.u32 (!%p2451_p11), 1, %s1927_s11   ;;  %s1666_s24 = smul.u32 (!%p2451_p11), 192, %s1931_s12 }
  0x16   : > { %s2460_s22 = scalar_select %p2048_p10, 1, 0 }
  0x17   : > { %s1710_s25 = smul.u32 (!%p2451_p11), 12, %s2056_s23  ;;  %s2063_s28 = scalar_lea.hbm (!%p2451_p11), %s2438_s0, %s1666_s24 }
  0x18   : > { %s297_s16 = scalar_lea.sflag (!%p2451_p11), [#allocation3], %s2056_s23  ;;  %s1805_s17 = scalar_lea.hbm (!%p2451_p11), %s2063_s28, 192 }
  0x19   : > { %s300_s29 = scalar_lea.vmem (!%p2451_p11), [#allocation2], %s1710_s25  ;;  %p1806_p12 = scmp.ne.s32.totalorder (!%p2451_p11), %s2063_s28, %s1805_s17 }
  0x1a   : > { %s308_s14 = sshll.u32 (!%p2451_p11), %s300_s29, 4  ;;  %s1809_s15 = scalar_lea.hbm (!%p2451_p11), %s2438_s0, 384  ;;  %s309_s14 = int_to_ptr.vmem [resolvable:$true] %s308_s14 }
  0x1b   : > { %p1807_p13 = pnand %p1806_p12, %p2035_p5  ;;  %p1810_p1 = scmp.lt.u32.totalorder %s2063_s28, %s2438_s0 }
  0x1c   : > { %p1811_p2 = scmp.lt.u32.totalorder %s1809_s15, %s1805_s17  ;;  %p1813_p4 = scmp.lt.u32.totalorder %s1805_s17, %s2063_s28 }
  0x1d   : > { %p1808_p0 = pneg %p1807_p13 }
  0x1e   : > { %p1812_p3 = por %p1811_p2, %p1810_p1 }
  0x20   : > { %p1814_p7 = por %p1813_p4, %p1812_p3 }
  0x22   : > { %p1815_p8 = pnand %p1814_p7, %p1808_p0 }
  0x24   : > { %1818 = shalt.err (!%p1815_p8)
}
  0x25   : > { %s1819_s25 = scalar_lea.vmem %s309_s14, 192  ;;  %s1933_s27 = smov [#allocation2]  }
  0x26   : > { %p1820_p11 = scmp.ne.s32.totalorder %s309_s14, %s1819_s25  ;;  %s1823_s29 = sshll.u32 %s1933_s27, 4  ;;  %s1824_s29 = int_to_ptr.vmem [resolvable:$false] %s1823_s29 }
  0x27   : > { %s1825_s11 = scalar_lea.vmem %s1824_s29, 384  ;;  %p1826_p10 = scmp.lt.s32.totalorder %s309_s14, %s1824_s29 }
  0x28   : > { %p1821_p12 = pnand %p1820_p11, %p2035_p5  ;;  %p1827_p9 = scmp.lt.s32.totalorder %s1825_s11, %s1819_s25 }
  0x2a   : > { %p1822_p13 = pneg %p1821_p12  ;;  %p1828_p6 = por %p1827_p9, %p1826_p10 }
  0x2c   : > { %p1829_p1 = pnand %p1828_p6, %p1822_p13 }
  0x2e   : > { %1832 = shalt.err (!%p1829_p1)
}
  0x2f   : > { %1717 = dma.hbm_to_vmem [thread:$0]  (%p2035_p5), %s2063_s28, 192, %s309_s14, %s297_s16  }
  0x30   : > { %314 = sbr.rel (!%p2035_p5) target bundleno = 55 (0x37), region = 44  ;;  %s1624_s18 = sshll.u32 (%p2035_p5), %s1931_s12, 3 }
  0x31   : > { %s1711_s15 = smul.u32 (%p2035_p5), 24, %s2056_s23  ;;  %s320_s24 = scalar_lea.vmem (%p2035_p5), %s2439_s1, %s1624_s18 }
  0x32   : > { %v352_v0 = vld [vmem:[%s320_s24] sm:$0xff] (%p2035_p5)  ;;  %v354_v1 = vld [vmem:[%s320_s24 + $0x10] sm:$0xff] (%p2035_p5) }
  0x33   : > { %v356_v2 = vld [vmem:[%s320_s24 + $0x20] sm:$0xff] (%p2035_p5)  ;;  %s318_s25 = scalar_lea.vmem (%p2035_p5), [#allocation5], %s1711_s15 }
  0x34   : > { %353 = vst [vmem:[%s318_s25] sm:$0xff] (%p2035_p5), %v352_v0  ;;  %355 = vst [vmem:[%s318_s25 + $0x8] sm:$0xff] (%p2035_p5), %v354_v1 }
  0x35   : > { %357 = vst [vmem:[%s318_s25 + $0x10] sm:$0xff] (%p2035_p5), %v356_v2 }
  0x37 PF: > { %363 = sbr.rel (!%p2035_p5) target bundleno = 63 (0x3f), region = 82 }
  0x38   : > { %s1712_s28 = smul.u32 (%p2035_p5), 24, %s2056_s23 }
  0x39   : > { %s1667_s14 = smul.u32 (%p2035_p5), 12, %s1931_s12 }
  0x3a   : > { %s367_s11 = scalar_lea.vmem (%p2035_p5), [#allocation6], %s1712_s28 }
  0x3b   : > { %s370_s29 = scalar_lea.vmem (%p2035_p5), %s2440_s2, %s1667_s14 }
  0x3c   : > { %v385_v3 = vld [vmem:[%s370_s29] sm:$0xff] (%p2035_p5)  ;;  %v387_v4 = vld [vmem:[%s370_s29 + $0x18] sm:$0xff] (%p2035_p5)  ;;  %v1626_v5 = vld [vmem:[%s370_s29 + $0x8] sm:$0xf] (%p2035_p5) }
  0x3d   : > { %386 = vst [vmem:[%s367_s11] sm:$0xff] (%p2035_p5), %v385_v3  ;;  %388 = vst [vmem:[%s367_s11 + $0xc] sm:$0xff] (%p2035_p5), %v387_v4  ;;  %v1628_v6 = vld [vmem:[%s370_s29 + $0x20] sm:$0xf] (%p2035_p5) }
  0x3e   : > { %1627 = vst [vmem:[%s367_s11 + $0x8] sm:$0xf] %v1626_v5  ;;  %1629 = vst [vmem:[%s367_s11 + $0x14] sm:$0xf] %v1628_v6 }
  0x3f PF: > { %s1713_s15 = smul.u32 24, %s2056_s23  ;;  %s1630_s18 = sshll.u32 %s1931_s12, 7 }
  0x40   : > { %s2102_s24 = scalar_lea.hbm %s2441_s3, %s1630_s18  ;;  %s407_s14 = scalar_lea.sflag [#allocation8], %s2056_s23 }
  0x41   : > { %s410_s25 = scalar_lea.vmem [#allocation7], %s1713_s15  ;;  %s1833_s16 = scalar_lea.hbm %s2102_s24, 384 }
  0x42   : > { %s416_s28 = sshll.u32 %s410_s25, 4  ;;  %p1834_p6 = scmp.ne.s32.totalorder %s2102_s24, %s1833_s16  ;;  %s2104_s28 = int_to_ptr.vmem [resolvable:$true] %s416_s28 }
  0x43   : > { %s1837_s11 = scalar_lea.hbm %s2441_s3, 768  ;;  %p1838_p11 = scmp.lt.u32.totalorder %s2102_s24, %s2441_s3 }
  0x44   : > { %p1835_p9 = pnand %p1834_p6, %p2035_p5  ;;  %p1839_p0 = scmp.lt.u32.totalorder %s1837_s11, %s1833_s16 }
  0x45   : > { %p1841_p3 = scmp.lt.u32.totalorder %s1833_s16, %s2102_s24 }
  0x46   : > { %p1836_p10 = pneg %p1835_p9  ;;  %p1840_p2 = por %p1839_p0, %p1838_p11 }
  0x48   : > { %p1842_p4 = por %p1841_p3, %p1840_p2 }
  0x4a   : > { %p1843_p7 = pnand %p1842_p4, %p1836_p10 }
  0x4c   : > { %1846 = shalt.err (!%p1843_p7)
}
  0x4d   : > { %s1847_s15 = scalar_lea.vmem %s2104_s28, 384  ;;  %s1934_s26 = smov [#allocation7]  }
  0x4e   : > { %p1848_p8 = scmp.ne.s32.totalorder %s2104_s28, %s1847_s15  ;;  %s1851_s25 = sshll.u32 %s1934_s26, 4  ;;  %s1852_s25 = int_to_ptr.vmem [resolvable:$false] %s1851_s25 }
  0x4f   : > { %s1853_s27 = scalar_lea.vmem %s1852_s25, 768  ;;  %p1854_p1 = scmp.lt.s32.totalorder %s2104_s28, %s1852_s25 }
  0x50   : > { %p1849_p12 = pnand %p1848_p8, %p2035_p5  ;;  %p1855_p6 = scmp.lt.s32.totalorder %s1853_s27, %s1847_s15 }
  0x52   : > { %p1850_p13 = pneg %p1849_p12  ;;  %p1856_p9 = por %p1855_p6, %p1854_p1 }
  0x54   : > { %p1857_p11 = pnand %p1856_p9, %p1850_p13 }
  0x56   : > { %1860 = shalt.err (!%p1857_p11)
}
  0x57   : > { %s1935_s16 = smov 256   ;;  %s1936_s29 = smov 128  }
  0x58   : > { %s1937_s11 = smov 8  }
  0x59   : > { %1718 = dma.hbm_to_vmem [thread:$0]  (%p2035_p5), %s2102_s24, 384, %s2104_s28, %s407_s14, %s1935_s16, %s1936_s29, %s1937_s11  }
  0x5a PF: > { %p1631_p10 = scmp.ge.s32.totalorder %s1931_s12, 1  ;;  %p424_p0 = scmp.lt.s32.totalorder %s1931_s12, 3 }
  0x5c   : > { %p425_p2 = pnand %p1631_p10, %p424_p0 }
  0x5d   : > { %s2133_s18 = sand.u32 (!%p425_p2), 1, %s1923_s10   ;;  %p2461_p3 = scmp.ne.s32.totalorder (!%p425_p2), %s2458_s20, 0 }
  0x5e   : > { %428 = sbr.rel (%p425_p2) target bundleno = 748 (0x2ec), region = 112  ;;  %s431_s15 = scalar_lea.sflag (!%p425_p2), [#allocation3], %s2133_s18 }
  0x5f   : > { %s1714_s17 = smul.u32 (!%p425_p2), 12, %s2133_s18 }
  0x61   : > { %s2137_s26 = scalar_lea.vmem (!%p425_p2), [#allocation2], %s1714_s17 }
  0x65   : > { %1906 = dma.done.wait (%p2461_p3), %s431_s15, 192  }
  0x66   : > { %1908 = vsyncadd (%p2461_p3), %s431_s15, 4294967104  ;;  %s1715_s19 = smul.u32 24, %s2133_s18  ;;  %s454_s28 = scalar_lea.sflag [#allocation8], %s2133_s18 }
  0x68   : > { %s442_s23 = scalar_lea.vmem [#allocation5], %s1715_s19  ;;  %s2144_s24 = scalar_lea.vmem [#allocation6], %s1715_s19 }
  0x69   : > { %s2147_s14 = scalar_lea.vmem [#allocation7], %s1715_s19 }
  0x6a   : > { %1910 = dma.done.wait (%p2461_p3), %s454_s28, 384  }
  0x6b   : > { %1912 = vsyncadd (%p2461_p3), %s454_s28, 4294966912  ;;  %v541_v7 = vlaneseq  ;;  %v509_v13 = vld [vmem:[%s2137_s26] sm:$0x77]  ;;  %v533_v19 = vld [vmem:[%s442_s23 + $0x10] sm:$0xff]  ;;  %vm1040_vm2 = vcmask 23552   ;;  %s1668_s28 = smul.u32 384, %s2017_s13 }
  0x6c   : > { %v531_v14 = vld [vmem:[%s442_s23] sm:$0xff]  ;;  %v532_v15 = vld [vmem:[%s442_s23 + $0x8] sm:$0xff]  ;;  %v511_v18 = vmul.f32 %v509_v13, %v509_v13  ;;  %v537_v23 = vmul.f32 %v533_v19, %v533_v19  ;;  %s1471_s27 = scalar_lea.sflag [#allocation4], %s2133_s18  ;;  %p2462_p4 = scmp.ne.s32.totalorder %s2459_s21, 0 }
  0x6d   : > { %v2153_v8 = vshrl.u32 %v541_v7, 7  ;;  %v534_v20 = vmul.f32 %v531_v14, %v531_v14  ;;  %v535_v21 = vmul.f32 %v532_v15, %v532_v15  ;;  %v510_v31 = vld [vmem:[%s2137_s26 + $0x8] sm:$0x7]  ;;  %s1716_s26 = smul.u32 48, %s2133_s18  ;;  %s1942_s13 = smov [#allocation9]  }
  0x6e   : > { %v1632_v27 = vrot.slane %v511_v18, 9  ;;  %v1634_v28 = vrot.slane %v511_v18, 10  ;;  %v512_v48 = vmul.f32 %v510_v31, %v510_v31  ;;  %s1865_s29 = sshll.u32 %s1942_s13, 4  ;;  %s1866_s29 = int_to_ptr.vmem [resolvable:$false] %s1865_s29 }
  0x6f   : > { %v547_v9 = vsub.s32 4, %v2153_v8  ;;  %v2157_v10 = vsub.s32 0, %v2153_v8  ;;  %v577_v11 = vsub.s32 5, %v2153_v8  ;;  %v610_v12 = vsub.s32 6, %v2153_v8  ;;  %s504_s19 = scalar_lea.vmem [#allocation9], %s1716_s26  ;;  %s1867_s11 = scalar_lea.vmem %s1866_s29, 1536 }
  0x70   : > { %v573_v16 = vsub.s32 1, %v2153_v8  ;;  %v606_v17 = vsub.s32 2, %v2153_v8  ;;  %v536_v29 = vadd.f32 %v535_v21, %v534_v20  ;;  %v521_v36 = vadd.f32 %v1632_v27, %v511_v18  ;;  %s1484_s23 = sshll.u32 %s504_s19, 4  ;;  %s2389_s23 = int_to_ptr.vmem [resolvable:$true] %s1484_s23 }
  0x71   : > { %v548_v22 = vrot.slane %v509_v13, %v547_v9  ;;  %v578_v24 = vrot.slane %v509_v13, %v577_v11  ;;  %v611_v25 = vrot.slane %v509_v13, %v610_v12  ;;  %v544_v26 = vrot.slane %v509_v13, %v2157_v10  ;;  %s1861_s16 = scalar_lea.vmem %s2389_s23, 768  ;;  %p1868_p12 = scmp.lt.s32.totalorder %s2389_s23, %s1866_s29 }
  0x72   : > { %v574_v35 = vrot.slane %v509_v13, %v573_v16  ;;  %v607_v38 = vrot.slane %v509_v13, %v606_v17  ;;  %v529_v43 = vadd.f32 %v1634_v28, %v521_v36  ;;  %v538_v45 = vadd.f32 %v537_v23, %v536_v29  ;;  %v2199_v36 = vld [vmem:[%s2443_s5] sm:$0xff]   ;;  %p1862_p5 = scmp.ne.s32.totalorder %s2389_s23, %s1861_s16  ;;  %p1869_p13 = scmp.lt.s32.totalorder %s1867_s11, %s1861_s16 }
  0x73   : > { %v563_v30 = vrot.slane %v548_v22, %v2157_v10  ;;  %v593_v32 = vrot.slane %v578_v24, %v573_v16  ;;  %v626_v33 = vrot.slane %v611_v25, %v606_v17  ;;  %v559_v34 = vrot.slane %v544_v26, %v2157_v10  ;;  %1680 = vmatprep.mubr.msk.bf16.mxu1 %vm1040_vm2, %v2199_v36 }
  0x74   : > { %v589_v42 = vrot.slane %v574_v35, %v573_v16  ;;  %v622_v44 = vrot.slane %v607_v38, %v606_v17  ;;  %v646_v49 = vrot.slane %v529_v43, %v547_v9  ;;  %v642_v51 = vrot.slane %v529_v43, %v2157_v10  ;;  %p1863_p7 = pnand %p1862_p5, %p2462_p4  ;;  %p1870_p1 = por %p1869_p13, %p1868_p12 }
  0x75   : > { %v569_v37 = vmul.f32 %v563_v30, %v531_v14  ;;  %v599_v39 = vmul.f32 %v593_v32, %v532_v15  ;;  %v632_v40 = vmul.f32 %v626_v33, %v533_v19  ;;  %v568_v41 = vmul.f32 %v559_v34, %v531_v14 }
  0x76   : > { %v598_v47 = vmul.f32 %v589_v42, %v532_v15  ;;  %v631_v50 = vmul.f32 %v622_v44, %v533_v19  ;;  %v552_v52 = vrot.slane %v510_v31, %v2157_v10  ;;  %v582_v55 = vrot.slane %v510_v31, %v573_v16  ;;  %p1864_p8 = pneg %p1863_p7 }
  0x77   : > { %v602_v46 = vadd.f32 %v599_v39, %v569_v37  ;;  %v661_v56 = vrot.slane %v646_v49, %v2157_v10  ;;  %v657_v57 = vrot.slane %v642_v51, %v2157_v10  ;;  %v1633_v60 = vrot.slane %v512_v48, 9 }
  0x78   : > { %v601_v54 = vadd.f32 %v598_v47, %v568_v41  ;;  %v1635_v63 = vrot.slane %v512_v48, 10  ;;  %v567_v0 = vrot.slane %v552_v52, %v2157_v10  ;;  %v597_v3 = vrot.slane %v582_v55, %v573_v16  ;;  %p1871_p6 = pnand %p1870_p1, %p1864_p8 }
  0x79   : > { %v635_v53 = vadd.f32 %v632_v40, %v602_v46  ;;  %v667_v61 = vadd.f32 %v661_v56, %v538_v45  ;;  %v666_v62 = vadd.f32 %v657_v57, %v538_v45  ;;  %v522_v2 = vadd.f32 %v1633_v60, %v512_v48 }
  0x7a   : > { %v634_v59 = vadd.f32 %v631_v50, %v601_v54  ;;  %v615_v4 = vrot.slane %v510_v31, %v606_v17  ;;  %v570_v6 = vmul.f32 %v567_v0, %v531_v14  ;;  %v600_v11 = vmul.f32 %v597_v3, %v532_v15 }
  0x7b   : > { %v670_v58 = vmul.f32 2.0, %v635_v53  ;;  %v530_v9 = vadd.f32 %v1635_v63, %v522_v2  ;;  %v1938_v41 = vmov 0   ;;  %v1299_v63 = vld [vmem:[%s2444_s6 + $0x10] sm:$0xff] }
  0x7c   : > { %v669_v1 = vmul.f32 2.0, %v634_v59  ;;  %v630_v12 = vrot.slane %v615_v4, %v606_v17  ;;  %v603_v20 = vadd.f32 %v600_v11, %v570_v6  ;;  %1092 = vmatprep.mubr.bf16.mxu0 %v1938_v41  ;;  %1770 = vset.pattern.permute.xlu0 %v1938_v41  ;;  %v1298_v4 = vld [vmem:[%s2444_s6 + $0x8] sm:$0xff] }
  0x7d   : > { %v2173_v5 = vsub.f32 %v667_v61, %v670_v58  ;;  %v650_v22 = vrot.slane %v530_v9, %v2157_v10  ;;  %1771 = vset.pattern.permute.xlu1 %v1938_v41 }
  0x7e   : > { %v2175_v7 = vsub.f32 %v666_v62, %v669_v1  ;;  %v633_v21 = vmul.f32 %v630_v12, %v533_v19  ;;  %v1297_v62 = vld [vmem:[%s2444_s6] sm:$0xff]  ;;  %1313 = vperm.xlu1 %1771, %v1299_v63  }
  0x7f   : > { %v683_v13 = vrot.slane %v2173_v5, 4  ;;  %v665_v14 = vrot.slane %v650_v22, %v2157_v10  ;;  %1303 = vperm.xlu0 %1770, %v1297_v62  }
  0x80   : > { %v677_v18 = vrot.slane %v2175_v7, 4  ;;  %v636_v24 = vadd.f32 %v633_v21, %v603_v20 }
  0x81   : > { %v684_v23 = vmin.f32 %v2173_v5, %v683_v13  ;;  %v668_v27 = vadd.f32 %v665_v14, %v538_v45  ;;  %v1353_v13 = vld [vmem:[%s2446_s8] sm:$0xff] }
  0x82   : > { %v678_v16 = vmin.f32 %v2175_v7, %v677_v18  ;;  %v671_v15 = vmul.f32 2.0, %v636_v24  ;;  %v1354_v18 = vld [vmem:[%s2446_s8 + $0x8] sm:$0xff] }
  0x83   : > { %v685_v25 = vrot.slane %v684_v23, 2  ;;  %1308 = vperm.xlu0 %1770, %v1298_v4  }
  0x84   : > { %v679_v26 = vrot.slane %v678_v16, 2  ;;  %v2183_v29 = vsub.f32 %v668_v27, %v671_v15 }
  0x85   : > { %v686_v17 = vmin.f32 %v684_v23, %v685_v25 }
  0x86   : > { %v680_v28 = vmin.f32 %v678_v16, %v679_v26  ;;  %v689_v19 = vrot.slane %v2183_v29, 4 }
  0x87   : > { %v687_v30 = vrot.slane %v686_v17, 1  ;;  %1357 = vperm.xlu0 %1770, %v1353_v13  }
  0x88   : > { %v681_v31 = vrot.slane %v680_v28, 1  ;;  %v690_v34 = vmin.f32 %v2183_v29, %v689_v19 }
  0x89   : > { %v2186_v32 = vmin.f32 %v686_v17, %v687_v30 }
  0x8a   : > { %v2188_v33 = vmin.f32 %v680_v28, %v681_v31  ;;  %v691_v35 = vrot.slane %v690_v34, 2 }
  0x8b   : > { %vm696_vm0 = vcmp.le.f32.partialorder %v2173_v5, %v2186_v32 }
  0x8c   : > { %v699_v10 = vsel %vm696_vm0, %v2153_v8, 8  ;;  %vm695_vm1 = vcmp.le.f32.partialorder %v2175_v7, %v2188_v33  ;;  %v692_v40 = vmin.f32 %v690_v34, %v691_v35  ;;  %v842_v62 = vadd.f32 1e-08, %v2188_v33 }
  0x8d   : > { %v710_v37 = vrot.slane %v699_v10, 4  ;;  %v698_v38 = vsel %vm695_vm1, %v2153_v8, 8 }
  0x8e   : > { %v701_v39 = vrot.slane %v698_v38, 4  ;;  %v693_v43 = vrot.slane %v692_v40, 1 }
  0x8f   : > { %vm711_vm3 = vcmp.lt.s32.totalorder %v699_v10, %v710_v37 }
  0x90   : > { %v712_v42 = vsel %vm711_vm3, %v699_v10, %v710_v37  ;;  %vm702_vm4 = vcmp.lt.s32.totalorder %v698_v38, %v701_v39  ;;  %v2207_v47 = vmin.f32 %v692_v40, %v693_v43 }
  0x91   : > { %v713_v44 = vrot.slane %v712_v42, 2  ;;  %v703_v45 = vsel %vm702_vm4, %v698_v38, %v701_v39 }
  0x92   : > { %v704_v46 = vrot.slane %v703_v45, 2  ;;  %vm697_vm7 = vcmp.le.f32.partialorder %v2183_v29, %v2207_v47 }
  0x93   : > { %vm714_vm5 = vcmp.lt.s32.totalorder %v712_v42, %v713_v44  ;;  %v700_v51 = vsel %vm697_vm7, %v2153_v8, 8 }
  0x94   : > { %v715_v48 = vsel %vm714_vm5, %v712_v42, %v713_v44  ;;  %vm705_vm6 = vcmp.lt.s32.totalorder %v703_v45, %v704_v46  ;;  %v719_v53 = vrot.slane %v700_v51, 4 }
  0x95   : > { %v716_v49 = vrot.slane %v715_v48, 1  ;;  %v706_v50 = vsel %vm705_vm6, %v703_v45, %v704_v46 }
  0x96   : > { %v707_v52 = vrot.slane %v706_v50, 1  ;;  %vm720_vm10 = vcmp.lt.s32.totalorder %v700_v51, %v719_v53 }
  0x97   : > { %vm717_vm8 = vcmp.lt.s32.totalorder %v715_v48, %v716_v49  ;;  %v721_v56 = vsel %vm720_vm10, %v700_v51, %v719_v53  ;;  %v843_v53 = vadd.f32 1e-08, %v2186_v32 }
  0x98   : > { %v2212_v54 = vsel %vm717_vm8, %v715_v48, %v716_v49  ;;  %vm708_vm9 = vcmp.lt.s32.totalorder %v706_v50, %v707_v52  ;;  %v722_v58 = vrot.slane %v721_v56, 2 }
  0x99   : > { %vm729_vm11 = vcmp.eq.s32.totalorder %v2153_v8, %v2212_v54  ;;  %v2216_v55 = vsel %vm708_vm9, %v706_v50, %v707_v52  ;;  %1781 = vrcp.f32 %v843_v53 }
  0x9a   : > { %v2222_v57 = vsel %vm729_vm11, inf, %v2173_v5  ;;  %vm728_vm12 = vcmp.eq.s32.totalorder %v2153_v8, %v2216_v55  ;;  %vm723_vm13 = vcmp.lt.s32.totalorder %v721_v56, %v722_v58  ;;  %v1300_v5 = vld [vmem:[%s2444_s6 + $0x18] sm:$0xff] }
  0x9b   : > { %v740_v59 = vrot.slane %v2222_v57, 4  ;;  %v2231_v60 = vsel %vm728_vm12, inf, %v2175_v7  ;;  %v724_v1 = vsel %vm723_vm13, %v721_v56, %v722_v58  ;;  %1318 = vperm.xlu1 %1771, %v1300_v5  }
  0x9c   : > { %v734_v61 = vrot.slane %v2231_v60, 4  ;;  %v725_v3 = vrot.slane %v724_v1, 1 }
  0x9d   : > { %v741_v0 = vmin.f32 %v2222_v57, %v740_v59 }
  0x9e   : > { %v735_v2 = vmin.f32 %v2231_v60, %v734_v61  ;;  %vm726_vm14 = vcmp.lt.s32.totalorder %v724_v1, %v725_v3 }
  0x9f   : > { %v742_v6 = vrot.slane %v741_v0, 2  ;;  %v2248_v11 = vsel %vm726_vm14, %v724_v1, %v725_v3  ;;  %1362 = vperm.xlu1 %1771, %v1354_v18  }
  0xa0   : > { %v736_v7 = vrot.slane %v735_v2, 2  ;;  %vm730_vm15 = vcmp.eq.s32.totalorder %v2153_v8, %v2248_v11 }
  0xa1   : > { %v743_v9 = vmin.f32 %v741_v0, %v742_v6  ;;  %v2262_v21 = vsel %vm730_vm15, inf, %v2183_v29 }
  0xa2   : > { %v737_v12 = vmin.f32 %v735_v2, %v736_v7  ;;  %v746_v23 = vrot.slane %v2262_v21, 4 }
  0xa3   : > { %v744_v20 = vrot.slane %v743_v9, 1 }
  0xa4   : > { %v738_v22 = vrot.slane %v737_v12, 1  ;;  %v747_v14 = vmin.f32 %v2262_v21, %v746_v23 }
  0xa5   : > { %v745_v16 = vmin.f32 %v743_v9, %v744_v20 }
  0xa6   : > { %v739_v24 = vmin.f32 %v737_v12, %v738_v22  ;;  %v748_v26 = vrot.slane %v747_v14, 2  ;;  %v844_v12 = vadd.f32 1e-08, %v2207_v47 }
  0xa7   : > { %vm753_vm0 = vcmp.le.f32.partialorder %v2222_v57, %v745_v16  ;;  %v849_v58 = vadd.f32 1e-08, %v745_v16 }
  0xa8   : > { %v756_v25 = vsel %vm753_vm0, %v2153_v8, 8  ;;  %vm752_vm1 = vcmp.le.f32.partialorder %v2231_v60, %v739_v24  ;;  %v749_v28 = vmin.f32 %v747_v14, %v748_v26  ;;  %v848_v0 = vadd.f32 1e-08, %v739_v24  ;;  %v1782_v14 = vpop.eup %1781 }
  0xa9   : > { %v767_v27 = vrot.slane %v756_v25, 4  ;;  %v755_v15 = vsel %vm752_vm1, %v2153_v8, 8  ;;  %1783 = vrcp.f32 %v849_v58 }
  0xaa   : > { %v758_v17 = vrot.slane %v755_v15, 4  ;;  %v750_v30 = vrot.slane %v749_v28, 1  ;;  %1785 = vrcp.f32 %v842_v62 }
  0xab   : > { %vm768_vm3 = vcmp.lt.s32.totalorder %v756_v25, %v767_v27  ;;  %1787 = vrcp.f32 %v848_v0 }
  0xac   : > { %v769_v29 = vsel %vm768_vm3, %v756_v25, %v767_v27  ;;  %vm759_vm4 = vcmp.lt.s32.totalorder %v755_v15, %v758_v17  ;;  %v751_v10 = vmin.f32 %v749_v28, %v750_v30 }
  0xad   : > { %v770_v31 = vrot.slane %v769_v29, 2  ;;  %v760_v19 = vsel %vm759_vm4, %v755_v15, %v758_v17 }
  0xae   : > { %v761_v34 = vrot.slane %v760_v19, 2  ;;  %vm754_vm7 = vcmp.le.f32.partialorder %v2262_v21, %v751_v10  ;;  %v850_v13 = vadd.f32 1e-08, %v751_v10 }
  0xaf   : > { %vm771_vm5 = vcmp.lt.s32.totalorder %v769_v29, %v770_v31  ;;  %v757_v39 = vsel %vm754_vm7, %v2153_v8, 8 }
  0xb0   : > { %v772_v35 = vsel %vm771_vm5, %v769_v29, %v770_v31  ;;  %vm762_vm6 = vcmp.lt.s32.totalorder %v760_v19, %v761_v34  ;;  %v776_v42 = vrot.slane %v757_v39, 4 }
  0xb1   : > { %v773_v37 = vrot.slane %v772_v35, 1  ;;  %v763_v38 = vsel %vm762_vm6, %v760_v19, %v761_v34 }
  0xb2   : > { %v764_v40 = vrot.slane %v763_v38, 1  ;;  %vm777_vm10 = vcmp.lt.s32.totalorder %v757_v39, %v776_v42 }
  0xb3   : > { %vm774_vm8 = vcmp.lt.s32.totalorder %v772_v35, %v773_v37  ;;  %v778_v45 = vsel %vm777_vm10, %v757_v39, %v776_v42  ;;  %v1784_v25 = vpop.eup %1783 }
  0xb4   : > { %v2272_v43 = vsel %vm774_vm8, %v772_v35, %v773_v37  ;;  %vm765_vm9 = vcmp.lt.s32.totalorder %v763_v38, %v764_v40  ;;  %v779_v48 = vrot.slane %v778_v45, 2  ;;  %v1786_v27 = vpop.eup %1785  ;;  %v861_v31 = vadd.f32 %v1784_v25, %v1782_v14 }
  0xb5   : > { %vm786_vm13 = vcmp.eq.s32.totalorder %v2153_v8, %v2272_v43  ;;  %v2276_v44 = vsel %vm765_vm9, %v763_v38, %v764_v40  ;;  %v1788_v28 = vpop.eup %1787 }
  0xb6   : > { %v789_v46 = vsel %vm786_vm13, inf, %v2222_v57  ;;  %vm785_vm14 = vcmp.eq.s32.totalorder %v2153_v8, %v2276_v44  ;;  %vm780_vm0 = vcmp.lt.s32.totalorder %v778_v45, %v779_v48  ;;  %v860_v35 = vadd.f32 %v1788_v28, %v1786_v27 }
  0xb7   : > { %v797_v49 = vrot.slane %v789_v46, 4  ;;  %v788_v50 = vsel %vm785_vm14, inf, %v2231_v60  ;;  %v781_v56 = vsel %vm780_vm0, %v778_v45, %v779_v48 }
  0xb8   : > { %v791_v51 = vrot.slane %v788_v50, 4  ;;  %v782_v61 = vrot.slane %v781_v56, 1 }
  0xb9   : > { %v798_v52 = vmin.f32 %v789_v46, %v797_v49 }
  0xba   : > { %v792_v59 = vmin.f32 %v788_v50, %v791_v51  ;;  %vm783_vm1 = vcmp.lt.s32.totalorder %v781_v56, %v782_v61 }
  0xbb   : > { %v799_v57 = vrot.slane %v798_v52, 2  ;;  %v2290_v2 = vsel %vm783_vm1, %v781_v56, %v782_v61 }
  0xbc   : > { %v793_v63 = vrot.slane %v792_v59, 2  ;;  %vm787_vm3 = vcmp.eq.s32.totalorder %v2153_v8, %v2290_v2 }
  0xbd   : > { %v800_v1 = vmin.f32 %v798_v52, %v799_v57  ;;  %v790_v3 = vsel %vm787_vm3, inf, %v2262_v21 }
  0xbe   : > { %v794_v60 = vmin.f32 %v792_v59, %v793_v63  ;;  %v803_v4 = vrot.slane %v790_v3, 4  ;;  %v1939_v63 = vmov 0.0  }
  0xbf   : > { %v801_v32 = vrot.slane %v800_v1, 1  ;;  %v1637_v0 = vsel %vm729_vm11, 1.0, %v1939_v63  ;;  %v1639_v54 = vsel %vm785_vm14, 1.0, %v1939_v63  ;;  %vm1031_vm14 = vcmask 1042434  }
  0xc0   : > { %v795_v33 = vrot.slane %v794_v60, 1  ;;  %v804_v7 = vmin.f32 %v790_v3, %v803_v4 }
  0xc1   : > { %v802_v5 = vmin.f32 %v800_v1, %v801_v32  ;;  %v1636_v1 = vsel %vm728_vm12, 1.0, %v1939_v63  ;;  %v1640_v32 = vsel %vm786_vm13, 1.0, %v1939_v63  ;;  %vm1047_vm13 = vcmask 1040384  }
  0xc2   : > { %v796_v6 = vmin.f32 %v794_v60, %v795_v33  ;;  %v805_v22 = vrot.slane %v804_v7, 2 }
  0xc3   : > { %vm810_vm4 = vcmp.le.f32.partialorder %v789_v46, %v802_v5  ;;  %v855_v9 = vadd.f32 1e-08, %v802_v5 }
  0xc4   : > { %v813_v18 = vsel %vm810_vm4, %v2153_v8, 8  ;;  %vm809_vm5 = vcmp.le.f32.partialorder %v788_v50, %v796_v6  ;;  %v854_v20 = vadd.f32 1e-08, %v796_v6  ;;  %v806_v24 = vmin.f32 %v804_v7, %v805_v22 }
  0xc5   : > { %v824_v23 = vrot.slane %v813_v18, 4  ;;  %1789 = vrcp.f32 %v855_v9  ;;  %v812_v21 = vsel %vm809_vm5, %v2153_v8, 8 }
  0xc6   : > { %v815_v16 = vrot.slane %v812_v21, 4  ;;  %1791 = vrcp.f32 %v854_v20  ;;  %v807_v47 = vrot.slane %v806_v24, 1 }
  0xc7   : > { %vm825_vm6 = vcmp.lt.s32.totalorder %v813_v18, %v824_v23  ;;  %1793 = vrcp.f32 %v844_v12 }
  0xc8   : > { %v826_v26 = vsel %vm825_vm6, %v813_v18, %v824_v23  ;;  %vm816_vm7 = vcmp.lt.s32.totalorder %v812_v21, %v815_v16  ;;  %1795 = vrcp.f32 %v850_v13  ;;  %v808_v30 = vmin.f32 %v806_v24, %v807_v47  ;;  %v2330_v24 = vld [vmem:[%s2147_s14 + $0x8] sm:$0xff] }
  0xc9   : > { %v827_v15 = vrot.slane %v826_v26, 2  ;;  %v817_v17 = vsel %vm816_vm7, %v812_v21, %v815_v16  ;;  %v914_v16 = vld [vmem:[%s2147_s14] sm:$0xff] }
  0xca   : > { %v818_v29 = vrot.slane %v817_v17, 2  ;;  %vm811_vm10 = vcmp.le.f32.partialorder %v790_v3, %v808_v30  ;;  %v856_v34 = vadd.f32 1e-08, %v808_v30 }
  0xcb   : > { %vm828_vm8 = vcmp.lt.s32.totalorder %v826_v26, %v827_v15  ;;  %v814_v37 = vsel %vm811_vm10, %v2153_v8, 8 }
  0xcc   : > { %v829_v19 = vsel %vm828_vm8, %v826_v26, %v827_v15  ;;  %vm819_vm9 = vcmp.lt.s32.totalorder %v817_v17, %v818_v29  ;;  %v833_v38 = vrot.slane %v814_v37, 4  ;;  %1797 = vrcp.f32 %v856_v34 }
  0xcd   : > { %v820_v10 = vsel %vm819_vm9, %v817_v17, %v818_v29  ;;  %v830_v40 = vrot.slane %v829_v19, 1  ;;  %v1641_v15 = vsel %vm787_vm3, 1.0, %v1939_v63  ;;  %vm1048_vm3 = vcmask 1041408  }
  0xce   : > { %v821_v46 = vrot.slane %v820_v10, 1  ;;  %vm834_vm0 = vcmp.lt.s32.totalorder %v814_v37, %v833_v38  ;;  %vm1188_vm8 = vcmask 130048   ;;  %vm1941_vm9 = vmmov 0  }
  0xcf   : > { %v1790_v39 = vpop.eup %1789  ;;  %v835_v50 = vsel %vm834_vm0, %v814_v37, %v833_v38  ;;  %vm831_vm1 = vcmp.lt.s32.totalorder %v829_v19, %v830_v40 }
  0xd0   : > { %v1792_v42 = vpop.eup %1791  ;;  %v864_v45 = vadd.f32 %v1790_v39, %v861_v31  ;;  %v836_v52 = vrot.slane %v835_v50, 2  ;;  %vm822_vm4 = vcmp.lt.s32.totalorder %v820_v10, %v821_v46  ;;  %v832_v58 = vsel %vm831_vm1, %v829_v19, %v830_v40 }
  0xd1   : > { %v1794_v48 = vpop.eup %1793  ;;  %v863_v49 = vadd.f32 %v1792_v42, %v860_v35  ;;  %v823_v59 = vsel %vm822_vm4, %v820_v10, %v821_v46  ;;  %vm897_vm6 = vcmp.eq.s32.totalorder %v2153_v8, %v832_v58 }
  0xd2   : > { %v2302_v51 = vpop.eup %1795  ;;  %1799 = vrcp.f32 %v864_v45  ;;  %vm837_vm5 = vcmp.lt.s32.totalorder %v835_v50, %v836_v52  ;;  %vm896_vm7 = vcmp.eq.s32.totalorder %v2153_v8, %v823_v59  ;;  %v1643_v3 = vsel %vm897_vm6, 1.0, %v1939_v63 }
  0xd3   : > { %1801 = vrcp.f32 %v863_v49  ;;  %v838_v53 = vsel %vm837_vm5, %v835_v50, %v836_v52  ;;  %v862_v56 = vadd.f32 %v2302_v51, %v1794_v48  ;;  %v1642_v6 = vsel %vm896_vm7, 1.0, %v1939_v63 }
  0xd4   : > { %v839_v57 = vrot.slane %v838_v53, 1 }
  0xd6   : > { %v2305_v61 = vpop.eup %1797  ;;  %vm840_vm11 = vcmp.lt.s32.totalorder %v838_v53, %v839_v57 }
  0xd7   : > { %v865_v62 = vadd.f32 %v2305_v61, %v862_v56  ;;  %v841_v20 = vsel %vm840_vm11, %v838_v53, %v839_v57 }
  0xd8   : > { %vm898_vm12 = vcmp.eq.s32.totalorder %v2153_v8, %v841_v20 }
  0xd9   : > { %1803 = vrcp.f32 %v865_v62  ;;  %v1644_v31 = vsel %vm898_vm12, 1.0, %v1939_v63 }
  0xdc   : > { %v1800_v60 = vpop.eup %1799 }
  0xdd   : > { %v1802_v33 = vpop.eup %1801  ;;  %v876_v4 = vmul.f32 %v1800_v60, %v1782_v14  ;;  %v888_v55 = vmul.f32 %v1800_v60, %v1784_v25  ;;  %v906_v5 = vmul.f32 %v1800_v60, %v1790_v39  ;;  %v2333_v14 = vld [vmem:[%s2147_s14 + $0x10] sm:$0xff]  ;;  %s2394_s14 = scalar_lea.hbm %s2447_s9, %s1668_s28 }
  0xde   : > { %v875_v7 = vmul.f32 %v1802_v33, %v1786_v27  ;;  %v887_v43 = vmul.f32 %v1802_v33, %v1788_v28  ;;  %v905_v9 = vmul.f32 %v1802_v33, %v1792_v42  ;;  %v1638_v27 = vsel %vm730_vm15, 1.0, %v1939_v63 }
  0xdf   : > { %v879_v12 = vmul.f32 %v1637_v0, %v876_v4  ;;  %v891_v13 = vmul.f32 %v1640_v32, %v888_v55  ;;  %v909_v18 = vmul.f32 %v1643_v3, %v906_v5  ;;  %vm1029_vm15 = vcmask 1041409  }
  0xe0   : > { %v878_v22 = vmul.f32 %v1636_v1, %v875_v7  ;;  %v890_v44 = vmul.f32 %v1639_v54, %v887_v43  ;;  %v908_v23 = vmul.f32 %v1642_v6, %v905_v9  ;;  %v1940_v43 = vmov 65535  }
  0xe1   : > { %v894_v21 = vadd.f32 %v891_v13, %v879_v12  ;;  %v1049_v9 = vsel %vm1047_vm13, 4294967295, %v1940_v43 }
  0xe2   : > { %v893_v25 = vadd.f32 %v890_v44, %v878_v22 }
  0xe3   : > { %v912_v26 = vadd.f32 %v909_v18, %v894_v21  ;;  %v1804_v17 = vpop.eup %1803 }
  0xe4   : > { %v911_v47 = vadd.f32 %v908_v23, %v893_v25  ;;  %v877_v11 = vmul.f32 %v1804_v17, %v1794_v48  ;;  %v889_v8 = vmul.f32 %v1804_v17, %v2302_v51  ;;  %v907_v58 = vmul.f32 %v1804_v17, %v2305_v61 }
  0xe5   : > { %v918_v28 = vmul.f32 %v914_v16, %v912_v26  ;;  %v921_v29 = vmul.f32 %v2330_v24, %v912_v26  ;;  %v924_v30 = vmul.f32 %v2333_v14, %v912_v26 }
  0xe6   : > { %v917_v19 = vmul.f32 %v914_v16, %v911_v47  ;;  %v920_v34 = vmul.f32 %v2330_v24, %v911_v47  ;;  %v923_v10 = vmul.f32 %v2333_v14, %v911_v47  ;;  %v880_v42 = vmul.f32 %v1638_v27, %v877_v11 }
  0xe7   : > { %v932_v35 = vrot.slane %v918_v28, 4  ;;  %v950_v37 = vrot.slane %v921_v29, 4  ;;  %v968_v38 = vrot.slane %v924_v30, 4  ;;  %v892_v50 = vmul.f32 %v1641_v15, %v889_v8 }
  0xe8   : > { %v926_v2 = vrot.slane %v917_v19, 4  ;;  %v944_v39 = vrot.slane %v920_v34, 4  ;;  %v962_v40 = vrot.slane %v923_v10, 4  ;;  %v910_v60 = vmul.f32 %v1644_v31, %v907_v58 }
  0xe9   : > { %v933_v45 = vadd.f32 %v932_v35, %v918_v28  ;;  %v951_v46 = vadd.f32 %v950_v37, %v921_v29  ;;  %v969_v49 = vadd.f32 %v968_v38, %v924_v30  ;;  %v895_v62 = vadd.f32 %v892_v50, %v880_v42 }
  0xea   : > { %v927_v52 = vadd.f32 %v926_v2, %v917_v19  ;;  %v945_v53 = vadd.f32 %v944_v39, %v920_v34  ;;  %v963_v56 = vadd.f32 %v962_v40, %v923_v10  ;;  %v1050_v42 = vsel %vm1048_vm3, %v1049_v9, 0 }
  0xeb   : > { %v934_v59 = vrot.slane %v933_v45, 2  ;;  %v952_v48 = vrot.slane %v951_v46, 2  ;;  %v970_v57 = vrot.slane %v969_v49, 2  ;;  %v913_v5 = vadd.f32 %v910_v60, %v895_v62  ;;  %v1775_v62 = vld [vmem:[%s2144_s24 + $0x4] ss:$12 sps:$4 sm:$0xff]  }
  0xec   : > { %v928_v0 = vrot.slane %v927_v52, 2  ;;  %v946_v51 = vrot.slane %v945_v53, 2  ;;  %v964_v1 = vrot.slane %v963_v56, 2 }
  0xed   : > { %v935_v32 = vadd.f32 %v934_v59, %v933_v45  ;;  %v953_v3 = vadd.f32 %v952_v48, %v951_v46  ;;  %v971_v54 = vadd.f32 %v970_v57, %v969_v49  ;;  %v919_v20 = vmul.f32 %v914_v16, %v913_v5 }
  0xee   : > { %v929_v33 = vadd.f32 %v928_v0, %v927_v52  ;;  %v947_v4 = vadd.f32 %v946_v51, %v945_v53  ;;  %v965_v55 = vadd.f32 %v964_v1, %v963_v56  ;;  %v922_v21 = vmul.f32 %v2330_v24, %v913_v5 }
  0xef   : > { %v936_v6 = vrot.slane %v935_v32, 1  ;;  %v954_v61 = vrot.slane %v953_v3, 1  ;;  %v972_v7 = vrot.slane %v971_v54, 1  ;;  %v925_v27 = vmul.f32 %v2333_v14, %v913_v5 }
  0xf0   : > { %v930_v12 = vrot.slane %v929_v33, 1  ;;  %v948_v13 = vrot.slane %v947_v4, 1  ;;  %v966_v18 = vrot.slane %v965_v55, 1  ;;  %v938_v29 = vrot.slane %v919_v20, 4 }
  0xf1   : > { %v937_v22 = vadd.f32 %v936_v6, %v935_v32  ;;  %v955_v44 = vadd.f32 %v954_v61, %v953_v3  ;;  %v973_v23 = vadd.f32 %v972_v7, %v971_v54  ;;  %v956_v34 = vrot.slane %v922_v21, 4  ;;  %v1773_v3 = vld [vmem:[%s2144_s24] ss:$12 sps:$4 sm:$0xff]  }
  0xf2   : > { %v931_v25 = vadd.f32 %v930_v12, %v929_v33  ;;  %v949_v26 = vadd.f32 %v948_v13, %v947_v4  ;;  %v967_v47 = vadd.f32 %v966_v18, %v965_v55  ;;  %v939_v35 = vadd.f32 %v938_v29, %v919_v20  ;;  %v1776_v12 = vld [vmem:[%s2443_s5 + $0x8] sm:$0xff]  }
  0xf3   : > { %v993_v15 = vpack.c.bf16 %v937_v22, %v937_v22  ;;  %v996_v17 = vpack.c.bf16 %v955_v44, %v955_v44  ;;  %v999_v28 = vpack.c.bf16 %v973_v23, %v973_v23  ;;  %v957_v8 = vadd.f32 %v956_v34, %v922_v21  ;;  %v1777_v20 = vld [vmem:[%s2144_s24 + $0x8] ss:$12 sps:$4 sm:$0xff]  }
  0xf4   : > { %v992_v30 = vpack.c.bf16 %v931_v25, %v931_v25  ;;  %v995_v31 = vpack.c.bf16 %v949_v26, %v949_v26  ;;  %v998_v19 = vpack.c.bf16 %v967_v47, %v967_v47  ;;  %v940_v14 = vrot.slane %v939_v35, 2  ;;  %v1779_v22 = vld [vmem:[%s2442_s4 + $0x8] sm:$0xff]  }
  0xf5   : > { %v1021_v10 = vunpack.c.l.b16 %v993_v15  ;;  %v1024_v16 = vunpack.c.l.b16 %v996_v17  ;;  %v1027_v11 = vunpack.c.l.b16 %v999_v28  ;;  %v974_v39 = vrot.slane %v925_v27, 4 }
  0xf6   : > { %v1020_v37 = vunpack.c.l.b16 %v992_v30  ;;  %v1023_v38 = vunpack.c.l.b16 %v995_v31  ;;  %v1026_v24 = vunpack.c.l.b16 %v998_v19  ;;  %v958_v46 = vrot.slane %v957_v8, 2 }
  0xf7   : > { %v1033_v2 = vsel %vm1029_vm15, %v1024_v16, %v1021_v10  ;;  %v941_v52 = vadd.f32 %v940_v14, %v939_v35  ;;  %v975_v53 = vadd.f32 %v974_v39, %v925_v27 }
  0xf8   : > { %v1034_v40 = vsel %vm1031_vm14, %v1027_v11, %v1033_v2  ;;  %v1030_v45 = vsel %vm1029_vm15, %v1023_v38, %v1020_v37  ;;  %v959_v58 = vadd.f32 %v958_v46, %v957_v8 }
  0xf9   : > { %v1038_v49 = vpack.c.b16 %v1034_v40, %v1034_v40  ;;  %v1032_v50 = vsel %vm1031_vm14, %v1026_v24, %v1030_v45  ;;  %v942_v48 = vrot.slane %v941_v52, 1  ;;  %v976_v57 = vrot.slane %v975_v53, 2 }
  0xfa   : > { %v1037_v56 = vpack.c.b16 %v1032_v50, %v1032_v50  ;;  %v960_v51 = vrot.slane %v959_v58, 1 }
  0xfb   : > { %v1055_v59 = vand.u32 %v1050_v42, %v1038_v49  ;;  %v943_v1 = vadd.f32 %v942_v48, %v941_v52  ;;  %v977_v60 = vadd.f32 %v976_v57, %v975_v53 }
  0xfc   : > { %v1052_v0 = vand.u32 %v1050_v42, %v1037_v56  ;;  %v961_v32 = vadd.f32 %v960_v51, %v959_v58 }
  0xfd   : > { %1060 = vmatprep.subr.bf16.mxu0 %v1055_v59  ;;  %v978_v54 = vrot.slane %v977_v60, 1  ;;  %v994_v33 = vpack.c.bf16 %v943_v1, %v943_v1  ;;  %v1314_v15 = vpop.permute.xlu1 %1313 }
  0xfe   : > { %1061 = vmatpush1.bf16.msra.mxu0 %v1052_v0  ;;  %v997_v4 = vpack.c.bf16 %v961_v32, %v961_v32  ;;  %v1304_v44 = vpop.permute.xlu0 %1303 }
  0xff   : > { %1195 = vmatprep.subr.bf16.mxu0 %v1775_v62  ;;  %v979_v55 = vadd.f32 %v978_v54, %v977_v60  ;;  %v1022_v5 = vunpack.c.l.b16 %v994_v33 }
 0x100   : > { %v1025_v6 = vunpack.c.l.b16 %v997_v4 }
 0x101   : > { %1647 = vmatmul.mubr.msk.bf16.vlgmr.msra.gmra.mrb[0].mxu0 %vm1040_vm2, %v2199_v36  ;;  %v1000_v61 = vpack.c.bf16 %v979_v55, %v979_v55  ;;  %v1778_v36 = vld [vmem:[%s2442_s4] sm:$0xff]  }
 0x102   : > { %1196 = vmatpush1.bf16.msra.mxu0 %v1773_v3  ;;  %1102 = vmatprep.mubr.bf16.mxu0 %v1938_v41  ;;  %v1035_v7 = vsel %vm1029_vm15, %v1025_v6, %v1022_v5  ;;  %v1309_v26 = vpop.permute.xlu0 %1308  ;;  %v1780_v3 = vld [vmem:[%s2445_s7] sm:$0xff]  }
 0x103   : > { %v1028_v43 = vunpack.c.l.b16 %v1000_v61 }
 0x105   : > { %v1036_v9 = vsel %vm1031_vm14, %v1028_v43, %v1035_v7 }
 0x106   : > { %v1039_v13 = vpack.c.b16 %v1036_v9, %v1036_v9  ;;  %v1358_v54 = vpop.permute.xlu0 %1357 }
 0x108   : > { %v1058_v18 = vand.u32 %v1050_v42, %v1039_v13 }
 0x109   : > { %1648 = vmatmul.mubr.msk.bf16.gmra.mrb[4].mxu0 %vm1040_vm2, %v1776_v12 }
 0x10a   : > { %1227 = vmatprep.mubr.bf16.mxu0 %v1938_v41  ;;  %1678 = vmatprep.subr.bf16.mxu1 %v1058_v18 }
 0x10b   : > { %1679 = vmatpush3.bf16.msra.mxu1 %v1058_v18 }
 0x10c   : > { %1684 = vmatprep.subr.bf16.mxu1 %v1777_v20 }
 0x10e   : > { %1681 = vmatmul.mubr.msk.bf16.vlgmr.msra.gmra.mrb[0].mxu1 %vm1040_vm2, %v1776_v12  ;;  %vm1370_vm2 = vcmask 261120  }
 0x10f   : > { %1685 = vmatpush3.bf16.msra.mxu1 %v1777_v20  ;;  %1686 = vmatprep.mubr.msk.bf16.mxu1 %vm1188_vm8, %v1778_v36 }
 0x111   : > { %1656 = vmatmul.mubr.msk.bf16.vlgmr.msra.gmra.mrb[0].mxu0 %vm1188_vm8, %v1778_v36 }
 0x112   : > { %1237 = vmatprep.mubr.bf16.mxu0 %v1938_v41 }
 0x119   : > { %1657 = vmatmul.mubr.msk.bf16.gmra.mrb[4].mxu0 %vm1188_vm8, %v1779_v22 }
 0x11a   : > { %1687 = vmatmul.mubr.msk.bf16.vlgmr.msra.gmra.mrb[0].mxu1 %vm1188_vm8, %v1779_v22  ;;  %v1319_v35 = vpop.permute.xlu1 %1318 }
 0x11b   : > { %1406 = vmatprep.mubr.bf16.mxu1 %v1938_v41 }
 0x11e   : > { %v1363_v5 = vpop.permute.xlu1 %1362 }
 0x1e4   : > { %v1229_v23 = vpop.f32.mrb[0].mxu0 }
 0x1e5   : > { %v1321_v21 = vadd.f32 %v1304_v44, %v1229_v23  ;;  %v1231_v25 = vpop.f32.mrb[1].mxu0 }
 0x1e6   : > { %v1322_v47 = vadd.f32 %v1304_v44, %v1231_v25  ;;  %v1233_v27 = vpop.f32.mrb[2].mxu0 }
 0x1e7   : > { %v1324_v17 = vadd.f32 %v1309_v26, %v1233_v27  ;;  %v1235_v28 = vpop.f32.mrb[3].mxu0  ;;  %v1333_v30 = vmax.f32 %v1321_v21, 0.0 }
 0x1e8   : > { %v1325_v29 = vadd.f32 %v1309_v26, %v1235_v28  ;;  %v1334_v19 = vmax.f32 %v1322_v47, 0.0 }
 0x1e9   : > { %v1336_v31 = vmax.f32 %v1324_v17, 0.0 }
 0x1ea   : > { %v1337_v34 = vmax.f32 %v1325_v29, 0.0 }
 0x1eb   : > { %v1347_v10 = vpack.c.bf16 %v1336_v31, %v1333_v30 }
 0x1ec   : > { %v1348_v16 = vpack.c.bf16 %v1337_v34, %v1334_v19  ;;  %v1239_v11 = vpop.f32.mrb[4].mxu0 }
 0x1ed   : > { %v1327_v41 = vadd.f32 %v1314_v15, %v1239_v11  ;;  %v1241_v37 = vpop.f32.mrb[5].mxu0  ;;  %v1688_v38 = vpop.f32.mrb[0].mxu1 }
 0x1ee   : > { %v1328_v24 = vadd.f32 %v1314_v15, %v1241_v37  ;;  %v1243_v8 = vpop.f32.mrb[6].mxu0  ;;  %1374 = vmatprep.subr.bf16.mxu1 %v1348_v16  ;;  %v1329_v2 = vadd.f32 %v1688_v38, %v1314_v15  ;;  %v1282_v14 = vpop.f32.mrb[1].mxu1 }
 0x1ef   : > { %v1330_v39 = vadd.f32 %v1319_v35, %v1243_v8  ;;  %v1245_v40 = vpop.f32.mrb[7].mxu0  ;;  %1375 = vmatpush1.bf16.msra.mxu1 %v1347_v10  ;;  %v1323_v42 = vadd.f32 %v1304_v44, %v1282_v14  ;;  %v1689_v45 = vpop.f32.mrb[2].mxu1  ;;  %v1339_v53 = vmax.f32 %v1327_v41, 0.0 }
 0x1f0   : > { %v1331_v46 = vadd.f32 %v1319_v35, %v1245_v40  ;;  %v1341_v49 = vmax.f32 %v1329_v2, 0.0  ;;  %v1332_v50 = vadd.f32 %v1689_v45, %v1319_v35  ;;  %v1285_v52 = vpop.f32.mrb[3].mxu1  ;;  %v1340_v48 = vmax.f32 %v1328_v24, 0.0 }
 0x1f1   : > { %v1342_v56 = vmax.f32 %v1330_v39, 0.0  ;;  %v1335_v58 = vmax.f32 %v1323_v42, 0.0  ;;  %v1326_v59 = vadd.f32 %v1309_v26, %v1285_v52 }
 0x1f2   : > { %v1343_v57 = vmax.f32 %v1331_v46, 0.0  ;;  %v1344_v62 = vmax.f32 %v1332_v50, 0.0 }
 0x1f3   : > { %v1350_v0 = vpack.c.bf16 %v1342_v56, %v1339_v53  ;;  %v1338_v51 = vmax.f32 %v1326_v59, 0.0 }
 0x1f4   : > { %v1351_v1 = vpack.c.bf16 %v1343_v57, %v1340_v48  ;;  %v1352_v60 = vpack.c.bf16 %v1344_v62, %v1341_v49 }
 0x1f5   : > { %v1349_v32 = vpack.c.bf16 %v1338_v51, %v1335_v58 }
 0x1f6   : > { %1376 = vmatprep.subr.bf16.mxu1 %v1351_v1 }
 0x1f7   : > { %1377 = vmatpush1.bf16.msra.mxu1 %v1350_v0 }
 0x1f8   : > { %1690 = vmatprep.subr.bf16.mxu1 %v1939_v63 }
 0x1fa   : > { %1661 = vmatmul.mubr.msk.bf16.vlgmr.msra.gmra.mrb[4].mxu1 %vm1370_vm2, %v1780_v3 }
 0x1fb   : > { %1691 = vmatpush3.bf16.msra.mxu1 %v1349_v32  ;;  %1694 = vmatprep.mubr.msk.bf16.mxu1 %vm1941_vm9, %v1939_v63 }
 0x1fc   : > { %1692 = vmatprep.subr.bf16.mxu1 %v1939_v63 }
 0x1ff   : > { %1693 = vmatpush3.bf16.msra.mxu1 %v1352_v60 }
 0x202   : > { %1695 = vmatmul.mubr.msk.bf16.vlgmr.msra.gmra.mrb[8].mxu1 %vm1370_vm2, %v1780_v3 }
 0x2cd   : > { %v1408_v33 = vpop.f32.mrb[4].mxu1 }
 0x2ce   : > { %v1409_v4 = vadd.f32 %v1408_v33, %v1358_v54  ;;  %v1410_v55 = vpop.f32.mrb[5].mxu1 }
 0x2cf   : > { %v1411_v6 = vadd.f32 %v1410_v55, %v1358_v54  ;;  %v1412_v61 = vpop.f32.mrb[6].mxu1 }
 0x2d0   : > { %v1458_v7 = vmax.f32 %v1409_v4, 0.0  ;;  %v1413_v43 = vadd.f32 %v1412_v61, %v1363_v5  ;;  %v1414_v9 = vpop.f32.mrb[7].mxu1 }
 0x2d1   : > { %v1459_v12 = vmax.f32 %v1411_v6, 0.0  ;;  %v1415_v13 = vadd.f32 %v1414_v9, %v1363_v5 }
 0x2d2   : > { %1464 = vst [vmem:[%s504_s19] sm:$0xff] %v1458_v7  ;;  %v1461_v18 = vmax.f32 %v1413_v43, 0.0 }
 0x2d3   : > { %1465 = vst [vmem:[%s504_s19 + $0x8] sm:$0xff] %v1459_v12  ;;  %v1462_v63 = vmax.f32 %v1415_v13, 0.0 }
 0x2d4   : > { %1467 = vst [vmem:[%s504_s19 + $0x18] sm:$0xff] %v1461_v18 }
 0x2d5   : > { %1468 = vst [vmem:[%s504_s19 + $0x20] sm:$0xff] %v1462_v63  ;;  %v1451_v20 = vpop.f32.mrb[8].mxu1 }
 0x2d6   : > { %v1452_v36 = vadd.f32 %v1451_v20, %v1358_v54  ;;  %v1696_v22 = vpop.f32.mrb[9].mxu1 }
 0x2d7   : > { %v1454_v44 = vpop.f32.mrb[10].mxu1 }
 0x2d8   : > { %v1460_v23 = vmax.f32 %v1452_v36, 0.0  ;;  %v1455_v21 = vadd.f32 %v1454_v44, %v1363_v5  ;;  %v1697_v25 = vpop.f32.mrb[11].mxu1 }
 0x2da   : > { %1466 = vst [vmem:[%s504_s19 + $0x10] sm:$0xff] %v1460_v23  ;;  %v1463_v26 = vmax.f32 %v1455_v21, 0.0 }
 0x2dc   : > { %1469 = vst [vmem:[%s504_s19 + $0x28] sm:$0xff] %v1463_v26 }
 0x2dd   : > { %1874 = shalt.err (!%p1871_p6)
}
 0x2de   : > { %s1875_s17 = scalar_lea.hbm %s2394_s14, 768  ;;  %s1879_s26 = scalar_lea.hbm %s2447_s9, 1536 }
 0x2df   : > { %p1876_p9 = scmp.ne.s32.totalorder %s2394_s14, %s1875_s17  ;;  %p1880_p0 = scmp.lt.u32.totalorder %s2394_s14, %s2447_s9 }
 0x2e0   : > { %p1881_p2 = scmp.lt.u32.totalorder %s1879_s26, %s1875_s17  ;;  %p1883_p5 = scmp.lt.u32.totalorder %s1875_s17, %s2394_s14 }
 0x2e1   : > { %p1877_p11 = pnand %p1876_p9, %p2462_p4 }
 0x2e2   : > { %p1882_p3 = por %p1881_p2, %p1880_p0 }
 0x2e3   : > { %p1878_p10 = pneg %p1877_p11 }
 0x2e4   : > { %p1884_p7 = por %p1883_p5, %p1882_p3 }
 0x2e6   : > { %p1885_p8 = pnand %p1884_p7, %p1878_p10 }
 0x2e8   : > { %1888 = shalt.err (!%p1885_p8)
}
 0x2e9   : > { %s1943_s20 = smov 384   ;;  %s1944_s25 = smov 768  }
 0x2ea   : > { %s1945_s16 = smov 24  }
 0x2eb   : > { %1721 = dma.vmem_to_hbm [thread:$0]  (%p2462_p4), %s2389_s23, 768, %s2394_s14, %s1471_s27, %s1943_s20, %s1944_s25, %s1945_s16  }
 0x2ec PF: > { %s1499_s13 = sand.u32 1, %s1919_s30   ;;  %p2463_p12 = scmp.ne.s32.totalorder %s2460_s22, 0 }
 0x2ed   : > { %p2464_p13 = scmp.ge.s32.totalorder %s1931_s12, 2  ;;  %s1500_s29 = scalar_lea.sflag [#allocation4], %s1499_s13 }
 0x2ef   : > { %p1724_p1 = pnand %p2464_p13, %p2463_p12 }
 0x2f1   : > { %1914 = dma.done.wait (!%p1724_p1), %s1500_s29, 768  }
 0x2f2   : > { %1916 = vsyncadd (!%p1724_p1), %s1500_s29, 4294966528  ;;  %s2465_s12 = sld [smem:[#allocation14_spill]]  ;;  %s2466_s11 = sld [smem:[#allocation13_spill]] }
 0x2f3   : > { %s2467_s17 = sld [smem:[#allocation15_spill]]  ;;  %s2468_s30 = smov %s1923_s10 }
 0x2f8   : > { %p25_p6 = scmp.ge.s32.totalorder %s2465_s12, 4   ;;  %s2469_s10 = smov %s2466_s11 }
 0x2f9   : > { %s2470_s11 = smov %s2467_s17 }
 0x2fa   :  { %27 = sbr.rel (!%p25_p6) target bundleno = 7 (0x7), region = 200 }
 0x301   :  { %1505 = vsyncpa [#allocation3], 1 }
 0x302   :  { %1507 = vsyncpa [#allocation3 + $0x1], 1 }
 0x303   :  { %1508 = vsyncpa [#allocation8], 1 }
 0x304   :  { %1510 = vsyncpa [#allocation8 + $0x1], 1 }
 0x305   :  { %1511 = vsyncpa [#allocation4], 1 }
 0x306   :  { %1513 = vsyncpa [#allocation4 + $0x1], 1 }

</bundles_post_ra>
